<compile_context>
chip_gen: v5e
topology: v5e:2x2
jax: 0.10.0
libtpu: 0.0.40
codegen_flags: <defaults>
</compile_context>

<pallas_src>
import math

import jax
import jax.numpy as jnp
from jax.experimental import pallas as pl
from jax.experimental.pallas import tpu as pltpu


def _round_up(x, m):
    return (x + m - 1) // m * m


def _ceil_div(a, b):
    return -(-a // b)


def _arc_margin_kernel(f_ref, wt_ref, o_ref, acc_ref, wss_ref):
    # f_ref  : (TILE_N, TILE_K) bf16  row-normalized features (pre-scaled in wrapper)
    # wt_ref : (TILE_K, TILE_O) bf16  raw weight, transposed (canonical MXU RHS)
    # o_ref  : (TILE_N, TILE_O)       cosine output tile
    # acc_ref: (TILE_N, TILE_O) f32   matmul accumulator (resident across K)
    # wss_ref: (1, TILE_O)      f32   per-class weight sum-of-squares for this o-tile
    n_idx = pl.program_id(1)
    k_idx = pl.program_id(2)
    k_last = pl.num_programs(2) - 1

    @pl.when(k_idx == 0)
    def _():
        acc_ref[...] = jnp.zeros_like(acc_ref)

    @pl.when(jnp.logical_and(n_idx == 0, k_idx == 0))
    def _():
        wss_ref[...] = jnp.zeros_like(wss_ref)

    # Weight norm sums: built once per o-tile (first batch tile only),
    # accumulated over the K axis, reused for every later batch tile.
    @pl.when(n_idx == 0)
    def _():
        w32 = wt_ref[...].astype(jnp.float32)
        wss_ref[...] += jnp.sum(w32 * w32, axis=0, keepdims=True)

    # Canonical (M, K) @ (K, N) bf16 MXU matmul with fp32 accumulation.
    acc_ref[...] += jnp.dot(f_ref[...], wt_ref[...],
                            preferred_element_type=jnp.float32)

    @pl.when(k_idx == k_last)
    def _():
        # Fold the per-class weight inverse norm into the output columns.
        # (f/||f||) . w / ||w||  ==  ((f/||f||) . w) * rsqrt(sum(w^2))
        inv_w = jax.lax.rsqrt(jnp.maximum(wss_ref[...], jnp.float32(1e-24)))
        o_ref[...] = (acc_ref[...] * inv_w).astype(o_ref.dtype)


def _choose_tiles(n, d, out_features, out_itemsize, vmem_budget,
                  tile_n=None, tile_o=None, tile_k=None):
    d_128 = _round_up(d, 128)
    o_128 = _round_up(out_features, 128)

    # Batch tile: default 256, multiple of 16 (bf16 sublane packing).
    if tile_n is None:
        tile_n = 256
    tile_n = max(16, min(_round_up(tile_n, 16), _round_up(n, 16)))

    # K tile: full D when it fits a 2048-wide strip, otherwise balanced K tiles.
    if tile_k is None:
        k_max = 2048
        k_tiles = _ceil_div(d_128, k_max)
        tile_k = _round_up(_ceil_div(d_128, k_tiles), 128)
    else:
        tile_k = _round_up(min(tile_k, d_128), 128)
    d_pad = _round_up(d_128, tile_k)

    def need(t_o):
        return (2 * tile_n * tile_k * 2            # bf16 feature tile, double buffered
                + 2 * tile_k * t_o * 2             # bf16 weight tile, double buffered
                + 2 * tile_n * t_o * out_itemsize  # output tile, double buffered
                + tile_n * t_o * 4                 # fp32 accumulator scratch
                + 8 * t_o * 4)                     # weight sumsq scratch (sublane padded)

    if tile_o is None:
        tile_o = 128
        for cand in (8192, 4096, 2048, 1024, 512, 256, 128):
            c = min(cand, o_128)
            if need(c) <= vmem_budget:
                tile_o = c
                break
    else:
        tile_o = _round_up(min(tile_o, o_128), 128)

    # Keep >= 2 o-tiles when possible so both v7x TensorCores get work
    # (the outer o axis is the "parallel" / megacore axis).
    if o_128 // tile_o < 2 and o_128 >= 256:
        tile_o = _round_up(_ceil_div(o_128, 2), 128)

    n_pad = _round_up(n, tile_n)
    o_pad = _round_up(o_128, tile_o)
    return tile_n, tile_o, tile_k, n_pad, o_pad, d_pad, need(tile_o)


def arc_margin_product(features, weight, *, out_dtype=jnp.float32,
                       tile_n=None, tile_o=None, tile_k=None):
    """features: (N, ...) any trailing dims; weight: (out_features, in_features)."""
    n = features.shape[0]
    f2d = features.reshape(n, -1)
    out_features, in_features = weight.shape
    assert f2d.shape[1] == in_features
    out_itemsize = jnp.dtype(out_dtype).itemsize

    # Generation-aware VMEM budget (no hard 64 MiB clamp; v5e/v6e get 128 MiB).
    try:
        vmem_cap = int(pltpu.get_tpu_info().vmem_capacity_bytes)
    except Exception:
        vmem_cap = 64 << 20   # conservative fallback (v7x physical VMEM)
    vmem_budget = int(vmem_cap * 0.75)

    tn, to, tk, n_pad, o_pad, d_pad, need = _choose_tiles(
        n, in_features, out_features, out_itemsize, vmem_budget,
        tile_n=tile_n, tile_o=tile_o, tile_k=tile_k)

    # ---- Wrapper-side prep (one O(N*D) + O(O*D) pass, amortized over o/n tiles) ----
    # Features: fp32 L2 normalization (sumsq clamp 1e-24 == torch max(||x||,1e-12)),
    # then bf16 for the MXU.  inv_f is folded into the LHS, not the output tile.
    f32 = f2d.astype(jnp.float32)
    inv_f = jax.lax.rsqrt(
        jnp.maximum(jnp.sum(f32 * f32, axis=1, keepdims=True), jnp.float32(1e-24)))
    f_n = (f32 * inv_f).astype(jnp.bfloat16)
    if d_pad != in_features or n_pad != n:
        f_n = jnp.pad(f_n, ((0, n_pad - n), (0, d_pad - in_features)))

    # Weight: bf16, zero-padded, pre-transposed to (D, O) so the kernel matmul is
    # the canonical (M,K)@(K,N) form (no per-step XLU transpose, no fp32 residency).
    w = weight
    if o_pad != out_features or d_pad != in_features:
        w = jnp.pad(w, ((0, o_pad - out_features), (0, d_pad - in_features)))
    w_t = w.astype(jnp.bfloat16).T            # (d_pad, o_pad)

    o_tiles = o_pad // to
    n_tiles = n_pad // tn
    k_tiles = d_pad // tk
    grid = (o_tiles, n_tiles, k_tiles)        # o outer (parallel), n serial, k reduction

    # Advisory cost estimate with the true re-stream factors and output dtype.
    f_bytes = n_pad * d_pad * 2 * o_tiles                      # features re-read per o-tile
    w_bytes = d_pad * o_pad * 2 * (n_tiles if k_tiles > 1 else 1)
    out_bytes = n_pad * o_pad * out_itemsize
    cost = pl.CostEstimate(
        flops=2 * n_pad * o_pad * d_pad,
        transcendentals=o_pad,
        bytes_accessed=f_bytes + w_bytes + out_bytes)

    vmem_limit = int(min(int(vmem_cap * 0.85), max(need + (8 << 20), 32 << 20)))

    out = pl.pallas_call(
        _arc_margin_kernel,
        out_shape=jax.ShapeDtypeStruct((n_pad, o_pad), out_dtype),
        grid_spec=pltpu.PrefetchScalarGridSpec(
            num_scalar_prefetch=0,
            grid=grid,
            in_specs=[
                pl.BlockSpec((tn, tk), lambda o, i, k: (i, k)),   # normalized features
                pl.BlockSpec((tk, to), lambda o, i, k: (k, o)),   # transposed weight
            ],
            out_specs=pl.BlockSpec((tn, to), lambda o, i, k: (i, o)),
            scratch_shapes=[
                pltpu.VMEM((tn, to), jnp.float32),   # accumulator
                pltpu.VMEM((1, to), jnp.float32),    # weight sumsq per o-tile
            ],
        ),
        compiler_params=pltpu.CompilerParams(
            dimension_semantics=("parallel", "arbitrary", "arbitrary"),
            vmem_limit_bytes=vmem_limit,
        ),
        cost_estimate=cost,
    )(f_n, w_t)

    return out[:n, :out_features]


def init_arc_margin_weight(key, in_features, out_features):
    # Mirrors reset_parameters: uniform(-stdv, stdv), stdv = 1/sqrt(in_features)
    stdv = 1.0 / math.sqrt(in_features)
    return jax.random.uniform(
        key, (out_features, in_features), dtype=jnp.float32,
        minval=-stdv, maxval=stdv,
    )


if __name__ == "__main__":
    key = jax.random.PRNGKey(0)
    k_x, k_w = jax.random.split(key)

    # Small NCHW input consistent with forward()'s flattening:
    # (N=16, C=4, H=8, W=8) -> in_features = 256
    N, C, H, W = 16, 4, 8, 8
    in_features = C * H * W
    out_features = 1000   # classifier head; padded to 1024, split into 2 o-tiles

    x = jax.random.normal(k_x, (N, C, H, W), dtype=jnp.float32)
    weight = init_arc_margin_weight(k_w, in_features, out_features)

    cosine = arc_margin_product(x, weight)
    cosine = jax.block_until_ready(cosine)

    # fp32 reference (kernel uses bf16 MXU operands with fp32 accumulation).
    xf = x.reshape(N, -1)
    xn = xf / jnp.maximum(jnp.linalg.norm(xf, axis=1, keepdims=True), 1e-12)
    wn = weight / jnp.maximum(jnp.linalg.norm(weight, axis=1, keepdims=True), 1e-12)
    ref = xn @ wn.T
    assert cosine.shape == (N, out_features)
    err = float(jnp.max(jnp.abs(cosine.astype(jnp.float32) - ref)))
    assert err < 8e-3, err

    print("KERNEL_OK")
</pallas_src>

<mosaic_0001>
module attributes {stable_mosaic.version = 11 : i64} {
  func.func @_arc_margin_kernel(%arg0: i32, %arg1: i32, %arg2: i32, %arg3: memref<16x256xbf16, #tpu.memory_space<vmem>>, %arg4: memref<256x512xbf16, #tpu.memory_space<vmem>>, %arg5: memref<16x512xf32, #tpu.memory_space<vmem>>, %arg6: memref<16x512xf32, #tpu.memory_space<vmem>>, %arg7: memref<1x512xf32, #tpu.memory_space<vmem>>) attributes {dimension_semantics = [#tpu.dimension_semantics<parallel>, #tpu.dimension_semantics<arbitrary>, #tpu.dimension_semantics<arbitrary>], iteration_bounds = array<i64: 2, 1, 1>, scalar_prefetch = 0 : i64, scratch_operands = 2 : i64, tpu.core_type = #tpu.core_type<tc>, window_params = [{transform_indices = @transform_0, window_bounds = array<i64: 16, 256>}, {transform_indices = @transform_1, window_bounds = array<i64: 256, 512>}, {transform_indices = @transform_2, window_bounds = array<i64: 16, 512>}]} {
    %c0_i32 = arith.constant 0 : i32
    %0 = arith.cmpi eq, %arg2, %c0_i32 : i32
    %1 = arith.extui %0 : i1 to i32
    %c0_i32_0 = arith.constant 0 : i32
    %2 = arith.cmpi ne, %1, %c0_i32_0 : i32
    scf.if %2 {
      %cst_15 = arith.constant 0.000000e+00 : f32
      %20 = vector.broadcast %cst_15 : f32 to vector<16x512xf32>
      %c0_16 = arith.constant 0 : index
      %c0_17 = arith.constant 0 : index
      %21 = vector.load %arg6[%c0_16, %c0_17] : memref<16x512xf32, #tpu.memory_space<vmem>>, vector<16x512xf32>
      tpu.vector_store %arg6[%c0_16, %c0_17], %20 {strides = array<i32>} : memref<16x512xf32, #tpu.memory_space<vmem>>, vector<16x512xf32>,
    } else {
    }
    %c0_i32_1 = arith.constant 0 : i32
    %3 = arith.cmpi eq, %arg1, %c0_i32_1 : i32
    %c0_i32_2 = arith.constant 0 : i32
    %4 = arith.cmpi eq, %arg2, %c0_i32_2 : i32
    %5 = arith.andi %3, %4 : i1
    %6 = arith.extui %5 : i1 to i32
    %c0_i32_3 = arith.constant 0 : i32
    %7 = arith.cmpi ne, %6, %c0_i32_3 : i32
    scf.if %7 {
      %cst_15 = arith.constant 0.000000e+00 : f32
      %20 = vector.broadcast %cst_15 : f32 to vector<1x512xf32>
      %c0_16 = arith.constant 0 : index
      %c0_17 = arith.constant 0 : index
      %21 = vector.load %arg7[%c0_16, %c0_17] : memref<1x512xf32, #tpu.memory_space<vmem>>, vector<1x512xf32>
      tpu.vector_store %arg7[%c0_16, %c0_17], %20 {strides = array<i32>} : memref<1x512xf32, #tpu.memory_space<vmem>>, vector<1x512xf32>,
    } else {
    }
    %c0_i32_4 = arith.constant 0 : i32
    %8 = arith.cmpi eq, %arg1, %c0_i32_4 : i32
    %9 = arith.extui %8 : i1 to i32
    %c0_i32_5 = arith.constant 0 : i32
    %10 = arith.cmpi ne, %9, %c0_i32_5 : i32
    scf.if %10 {
      %c0_15 = arith.constant 0 : index
      %c0_16 = arith.constant 0 : index
      %20 = vector.load %arg4[%c0_15, %c0_16] : memref<256x512xbf16, #tpu.memory_space<vmem>>, vector<256x512xbf16>
      %21 = arith.extf %20 : vector<256x512xbf16> to vector<256x512xf32>
      %c0_17 = arith.constant 0 : index
      %c0_18 = arith.constant 0 : index
      %22 = vector.load %arg7[%c0_17, %c0_18] : memref<1x512xf32, #tpu.memory_space<vmem>>, vector<1x512xf32>
      %23 = arith.mulf %21, %21 : vector<256x512xf32>
      %cst_19 = arith.constant dense<0.000000e+00> : vector<512xf32>
      %24 = vector.multi_reduction <add>, %23, %cst_19 [0] : vector<256x512xf32> to vector<512xf32>
      %25 = vector.shape_cast %24 : vector<512xf32> to vector<1x512xf32>
      %26 = arith.addf %22, %25 : vector<1x512xf32>
      %c0_20 = arith.constant 0 : index
      %c0_21 = arith.constant 0 : index
      %27 = vector.load %arg7[%c0_20, %c0_21] : memref<1x512xf32, #tpu.memory_space<vmem>>, vector<1x512xf32>
      tpu.vector_store %arg7[%c0_20, %c0_21], %26 {strides = array<i32>} : memref<1x512xf32, #tpu.memory_space<vmem>>, vector<1x512xf32>,
    } else {
    }
    %c0 = arith.constant 0 : index
    %c0_6 = arith.constant 0 : index
    %11 = vector.load %arg6[%c0, %c0_6] : memref<16x512xf32, #tpu.memory_space<vmem>>, vector<16x512xf32>
    %c0_7 = arith.constant 0 : index
    %c0_8 = arith.constant 0 : index
    %12 = vector.load %arg3[%c0_7, %c0_8] : memref<16x256xbf16, #tpu.memory_space<vmem>>, vector<16x256xbf16>
    %c0_9 = arith.constant 0 : index
    %c0_10 = arith.constant 0 : index
    %13 = vector.load %arg4[%c0_9, %c0_10] : memref<256x512xbf16, #tpu.memory_space<vmem>>, vector<256x512xbf16>
    %cst = arith.constant dense<0.000000e+00> : vector<16x512xf32>
    %14 = tpu.matmul %12, %13, %cst {dimension_numbers = #tpu.dot_dimension_numbers<[1], [0], [0], [1], [0, 0, 1, 1], [], []>} : vector<16x256xbf16>, vector<256x512xbf16>, vector<16x512xf32> -> vector<16x512xf32>
    %15 = arith.addf %11, %14 : vector<16x512xf32>
    %c0_11 = arith.constant 0 : index
    %c0_12 = arith.constant 0 : index
    %16 = vector.load %arg6[%c0_11, %c0_12] : memref<16x512xf32, #tpu.memory_space<vmem>>, vector<16x512xf32>
    tpu.vector_store %arg6[%c0_11, %c0_12], %15 {strides = array<i32>} : memref<16x512xf32, #tpu.memory_space<vmem>>, vector<16x512xf32>,
    %c0_i32_13 = arith.constant 0 : i32
    %17 = arith.cmpi eq, %arg2, %c0_i32_13 : i32
    %18 = arith.extui %17 : i1 to i32
    %c0_i32_14 = arith.constant 0 : i32
    %19 = arith.cmpi ne, %18, %c0_i32_14 : i32
    scf.if %19 {
      %c0_15 = arith.constant 0 : index
      %c0_16 = arith.constant 0 : index
      %20 = vector.load %arg7[%c0_15, %c0_16] : memref<1x512xf32, #tpu.memory_space<vmem>>, vector<1x512xf32>
      %cst_17 = arith.constant 1.000000e-24 : f32
      %21 = vector.broadcast %cst_17 : f32 to vector<1x512xf32>
      %22 = arith.maximumf %20, %21 : vector<1x512xf32>
      %23 = math.rsqrt %22 : vector<1x512xf32>
      %c0_18 = arith.constant 0 : index
      %c0_19 = arith.constant 0 : index
      %24 = vector.load %arg6[%c0_18, %c0_19] : memref<16x512xf32, #tpu.memory_space<vmem>>, vector<16x512xf32>
      %25 = vector.broadcast %23 : vector<1x512xf32> to vector<16x512xf32>
      %26 = arith.mulf %24, %25 : vector<16x512xf32>
      %c0_20 = arith.constant 0 : index
      %c0_21 = arith.constant 0 : index
      %27 = vector.load %arg5[%c0_20, %c0_21] : memref<16x512xf32, #tpu.memory_space<vmem>>, vector<16x512xf32>
      tpu.vector_store %arg5[%c0_20, %c0_21], %26 {strides = array<i32>} : memref<16x512xf32, #tpu.memory_space<vmem>>, vector<16x512xf32>,
    } else {
    }
    return
  }
  func.func @transform_0(%arg0: i32, %arg1: i32, %arg2: i32) -> (i32, i32) {
    %c0_i32 = arith.constant 0 : i32
    return %arg1, %arg2 : i32, i32
  }
  func.func @transform_1(%arg0: i32, %arg1: i32, %arg2: i32) -> (i32, i32) {
    %c0_i32 = arith.constant 0 : i32
    return %arg2, %arg0 : i32, i32
  }
  func.func @transform_2(%arg0: i32, %arg1: i32, %arg2: i32) -> (i32, i32) {
    %c0_i32 = arith.constant 0 : i32
    return %arg1, %arg0 : i32, i32
  }
}

</mosaic_0001>

<bundles_post_ra>
// kernel: tpu_custom_call.1
= control target key start
LH: loop header
LB: loop body
LE: loop exit
PB: predicated region body
PF: predicated region fallthrough
CT: control target
= control target key end

     0   :  { %7 = vsyncpa [#allocation5], 0  ;;  %s3236_s0 = inlined_call_operand.hbm [shape: bf16[16,256], index: 0, kind: input, shape index: {}]   ;;  %s3237_s1 = inlined_call_operand.hbm [shape: bf16[256,1024], index: 1, kind: input, shape index: {}]   ;;  %s3238_s2 = inlined_call_operand.hbm [shape: f32[16,1024], index: 2, kind: output, shape index: {}]  }
   0x1   :  { %8 = vsyncpa [#allocation8], 0 }
   0x2   :  { %10 = vsyncpa [#allocation8 + $0x1], 0 }
   0x3   :  { %11 = vsyncpa [#allocation6], 0 }
   0x4   :  { %13 = vsyncpa [#allocation6 + $0x1], 0  ;;  %s2052_s9 = smov 0   ;;  %s2054_s10 = smov 0  }
   0x5   :  { %s2056_s11 = smov 0   ;;  %s2058_s12 = smov 0  }
   0x6   :  { %s2060_s13 = smov 0   ;;  %s2062_s14 = smov 0  }
   0x7 LB: > { %s1446_s15 = sadd.s32 4294967295, %s2025_s14   ;;  %s1447_s16 = sadd.s32 4294967294, %s2025_s14   ;;  %s2025_s14 = sphi %s2062_s14, %s19_s14   ;;  %s2021_s13 = sphi %s2060_s13, %s3386_s13   ;;  %s2017_s12 = sphi %s2058_s12, %s3385_s12   ;;  %s2013_s11 = sphi %s2056_s11, %s3384_s11   ;;  %s2009_s10 = sphi %s2054_s10, %s3383_s10   ;;  %s2005_s9 = sphi %s2052_s9, %s3382_s9  }
   0x8   : > { %p88_p0 = scmp.ne.s32.totalorder %s2009_s10, %s2005_s9  ;;  %p2086_p1 = scmp.eq.s32.totalorder %s1446_s15, 0 }
   0x9   : > { %p2090_p2 = scmp.eq.s32.totalorder %s1446_s15, 1  ;;  %p120_p3 = scmp.eq.s32.totalorder %s1447_s16, 1 }
   0xa   : > { %p2096_p4 = por %p2086_p1, %p88_p0  ;;  %p1448_p5 = scmp.ge.s32.totalorder %s2025_s14, 1 }
   0xb   : > { %p2101_p6 = por %p120_p3, %p88_p0  ;;  %p127_p7 = scmp.lt.s32.totalorder %s2025_s14, 3 }
   0xc   : > { %s144_s23 = sshll.u32 %s3236_s0, 4  ;;  %s2027_s25 = smov [#allocation4]   ;;  %s145_s23 = int_to_ptr.hbm [resolvable:$true] %s144_s23 }
   0xd   : > { %p2109_p8 = pnand %p1448_p5, %p127_p7  ;;  %s146_s26 = sshll.u32 %s2027_s25, 4  ;;  %s147_s26 = int_to_ptr.vmem [resolvable:$true] %s146_s26 }
   0xe   : > { %p1450_p11 = scmp.ge.s32.totalorder %s2025_s14, 2  ;;  %s2028_s27 = smov 128  }
   0xf   : > { %p1803_p9 = pneg %p2109_p8  ;;  %s2029_s28 = smov 8  }
  0x10   : > { %s38_s29 = sadd.s32 1, %s2021_s13  ;;  %s75_s30 = sadd.s32 1, %s2013_s11 }
  0x11   : > { %p1804_p10 = pnand %p1803_p9, %p2086_p1  ;;  %p40_p12 = scmp.ge.s32.totalorder %s38_s29, 2 }
  0x12   : > { %p82_p13 = scmp.ne.s32.totalorder %s2013_s11, %s2009_s10  ;;  %p83_p0 = scmp.eq.s32.totalorder %s2025_s14, 0 }
  0x13   : > { %1806 = dma.hbm_to_vmem [thread:$0]  (!%p1804_p10), %s145_s23, 256, %s147_s26, [#allocation5], %s2028_s27, %s2028_s27, %s2029_s28  }
  0x14   : > { %s3388_s29 = smov (%p40_p12, %s38_s29), 0  ;;  %p2125_p3 = por %p83_p0, %p82_p13 }
  0x15   : > { %p2131_p5 = por %p2090_p2, %p82_p13  ;;  %s71_s5 = ssub.s32 %s2021_s13, %s3388_s29 }
  0x16   : > { %p1816_p7 = scmp.lt.s32.totalorder %s2025_s14, 2  ;;  %p73_p9 = scmp.eq.s32.totalorder %s71_s5, 0 }
  0x17   : > { %s160_s6 = sand.u32 1, %s2013_s11   ;;  %s1727_s15 = sshll.u32 %s2021_s13, 4 }
  0x18   : > { %s1451_s7 = sshll.u32 %s160_s6, 9  ;;  %s172_s22 = scalar_lea.hbm %s3237_s1, %s1727_s15 }
  0x19   : > { %s2140_s8 = scalar_select %p73_p9, %s2013_s11, %s75_s30  }
  0x1a   : > { %s164_s23 = scalar_lea.vmem [#allocation7], %s1451_s7  ;;  %s173_s18 = sshll.u32 %s172_s22, 4  ;;  %s174_s18 = int_to_ptr.hbm [resolvable:$true] %s173_s18 }
  0x1b   : > { %s175_s25 = sshll.u32 %s164_s23, 4  ;;  %p1808_p2 = pnand %p1816_p7, %p2125_p3  ;;  %s176_s25 = int_to_ptr.vmem [resolvable:$true] %s175_s25 }
  0x1c   : > { %s161_s26 = scalar_lea.sflag [#allocation8], %s160_s6  ;;  %s2030_s27 = smov 512  }
  0x1d   : > { %s2031_s28 = smov 256   ;;  %s2032_s5 = smov 16  }
  0x1e   : > { %1810 = dma.hbm_to_vmem [thread:$0]  (!%p1808_p2), %s174_s18, 8192, %s176_s25, %s161_s26, %s2030_s27, %s2031_s28, %s2032_s5  }
  0x1f   : > { %187 = sbr.rel (%p2109_p8) target bundleno = 259 (0x103), region = 28 }
  0x24   : > { %1992 = dma.done.wait (%p2086_p1), [#allocation5], 256  }
  0x25   : > { %1994 = vsyncadd (%p2086_p1), [#allocation5], 4294967040  ;;  %s2155_s30 = sand.u32 1, %s2009_s10  }
  0x26   : > { %s1456_s3 = sshll.u32 %s2155_s30, 9  ;;  %s195_s6 = scalar_lea.sflag [#allocation8], %s2155_s30 }
  0x27   : > { %s2159_s7 = scalar_lea.vmem [#allocation7], %s1456_s3 }
  0x28   : > { %1996 = dma.done.wait (%p2096_p4), %s195_s6, 8192  }
  0x29   : > { %1998 = vsyncadd (%p2096_p4), %s195_s6, 4294959104  ;;  %v1580_v0 = vld [vmem:[%s2159_s7 + $0xe0] sm:$0xf]  ;;  %v1760_v1 = vld [vmem:[%s2159_s7 + $0xec] sm:$0xf0]  ;;  %vm727_vm1 = vcmask 1040384  }
  0x2a   : > { %v1708_v2 = vld [vmem:[%s2159_s7 + $0x1e0] sm:$0xf]  ;;  %v1581_v3 = vor.u32 %v1760_v1, %v1580_v0  ;;  %v1792_v4 = vld [vmem:[%s2159_s7 + $0x1ec] sm:$0xf0]  ;;  %v1758_v5 = vld [vmem:[%s2159_s7 + $0xe4] sm:$0xf] }
  0x2b   : > { %v1582_v6 = vld [vmem:[%s2159_s7 + $0xf0] sm:$0xf0]  ;;  %v1709_v7 = vor.u32 %v1792_v4, %v1708_v2  ;;  %v1790_v9 = vld [vmem:[%s2159_s7 + $0x1e4] sm:$0xf]  ;;  %v1564_v11 = vld [vmem:[%s2159_s7 + $0xc0] sm:$0xf] }
  0x2c   : > { %v1585_v8 = vor.u32 %v1758_v5, %v1582_v6  ;;  %v1710_v10 = vld [vmem:[%s2159_s7 + $0x1f0] sm:$0xf0]  ;;  %1144 = vmatpush.bf16.msra.mxu0 %v1581_v3  ;;  %v1756_v13 = vld [vmem:[%s2159_s7 + $0xcc] sm:$0xf0]  ;;  %v1692_v14 = vld [vmem:[%s2159_s7 + $0x1c0] sm:$0xf] }
  0x2d   : > { %v1713_v12 = vor.u32 %v1790_v9, %v1710_v10  ;;  %v1788_v15 = vld [vmem:[%s2159_s7 + $0x1cc] sm:$0xf0]  ;;  %1158 = vmatpush.bf16.msra.mxu1 %v1709_v7  ;;  %v1565_v16 = vor.u32 %v1756_v13, %v1564_v11  ;;  %v1754_v18 = vld [vmem:[%s2159_s7 + $0xc4] sm:$0xf]  ;;  %v1566_v19 = vld [vmem:[%s2159_s7 + $0xd0] sm:$0xf0] }
  0x2e   : > { %1172 = vmatpush.bf16.msra.mxu2 %v1585_v8  ;;  %v1693_v17 = vor.u32 %v1788_v15, %v1692_v14  ;;  %v1786_v20 = vld [vmem:[%s2159_s7 + $0x1c4] sm:$0xf]  ;;  %v1569_v21 = vor.u32 %v1754_v18, %v1566_v19  ;;  %v1694_v22 = vld [vmem:[%s2159_s7 + $0x1d0] sm:$0xf0]  ;;  %v1548_v23 = vld [vmem:[%s2159_s7 + $0xa0] sm:$0xf] }
  0x2f   : > { %1186 = vmatpush.bf16.msra.mxu3 %v1713_v12  ;;  %v1752_v24 = vld [vmem:[%s2159_s7 + $0xac] sm:$0xf0]  ;;  %v1697_v25 = vor.u32 %v1786_v20, %v1694_v22  ;;  %v1676_v26 = vld [vmem:[%s2159_s7 + $0x1a0] sm:$0xf]  ;;  %v1750_v28 = vld [vmem:[%s2159_s7 + $0xa4] sm:$0xf] }
  0x30   : > { %v1784_v27 = vld [vmem:[%s2159_s7 + $0x1ac] sm:$0xf0]  ;;  %1145 = vmatpush.bf16.msra.mxu0 %v1565_v16  ;;  %v1549_v29 = vor.u32 %v1752_v24, %v1548_v23  ;;  %v1550_v30 = vld [vmem:[%s2159_s7 + $0xb0] sm:$0xf0]  ;;  %v1782_v31 = vld [vmem:[%s2159_s7 + $0x1a4] sm:$0xf] }
  0x31   : > { %v1678_v32 = vld [vmem:[%s2159_s7 + $0x1b0] sm:$0xf0]  ;;  %1159 = vmatpush.bf16.msra.mxu1 %v1693_v17  ;;  %v1677_v33 = vor.u32 %v1784_v27, %v1676_v26  ;;  %v1553_v34 = vor.u32 %v1750_v28, %v1550_v30  ;;  %v1532_v35 = vld [vmem:[%s2159_s7 + $0x80] sm:$0xf]  ;;  %v1748_v36 = vld [vmem:[%s2159_s7 + $0x8c] sm:$0xf0] }
  0x32   : > { %1173 = vmatpush.bf16.msra.mxu2 %v1569_v21  ;;  %v1660_v37 = vld [vmem:[%s2159_s7 + $0x180] sm:$0xf]  ;;  %v1681_v38 = vor.u32 %v1782_v31, %v1678_v32  ;;  %v1780_v39 = vld [vmem:[%s2159_s7 + $0x18c] sm:$0xf0]  ;;  %v1746_v40 = vld [vmem:[%s2159_s7 + $0x84] sm:$0xf]  ;;  %v1533_v44 = vor.u32 %v1748_v36, %v1532_v35 }
  0x33   : > { %1187 = vmatpush.bf16.msra.mxu3 %v1697_v25  ;;  %v1534_v41 = vld [vmem:[%s2159_s7 + $0x90] sm:$0xf0]  ;;  %v1778_v42 = vld [vmem:[%s2159_s7 + $0x184] sm:$0xf]  ;;  %v1661_v45 = vor.u32 %v1780_v39, %v1660_v37  ;;  %v1516_v47 = vld [vmem:[%s2159_s7 + $0x60] sm:$0xf] }
  0x34   : > { %v1662_v43 = vld [vmem:[%s2159_s7 + $0x190] sm:$0xf0]  ;;  %1146 = vmatpush.bf16.msra.mxu0 %v1549_v29  ;;  %v1537_v46 = vor.u32 %v1746_v40, %v1534_v41  ;;  %v1744_v48 = vld [vmem:[%s2159_s7 + $0x6c] sm:$0xf0]  ;;  %v1644_v49 = vld [vmem:[%s2159_s7 + $0x160] sm:$0xf] }
  0x35   : > { %1160 = vmatpush.bf16.msra.mxu1 %v1677_v33  ;;  %v1665_v50 = vor.u32 %v1778_v42, %v1662_v43  ;;  %v1776_v51 = vld [vmem:[%s2159_s7 + $0x16c] sm:$0xf0]  ;;  %v1742_v52 = vld [vmem:[%s2159_s7 + $0x64] sm:$0xf]  ;;  %v1518_v53 = vld [vmem:[%s2159_s7 + $0x70] sm:$0xf0]  ;;  %v1517_v56 = vor.u32 %v1744_v48, %v1516_v47 }
  0x36   : > { %1174 = vmatpush.bf16.msra.mxu2 %v1553_v34  ;;  %v1774_v54 = vld [vmem:[%s2159_s7 + $0x164] sm:$0xf]  ;;  %v1646_v55 = vld [vmem:[%s2159_s7 + $0x170] sm:$0xf0]  ;;  %v1645_v57 = vor.u32 %v1776_v51, %v1644_v49  ;;  %v1521_v58 = vor.u32 %v1742_v52, %v1518_v53  ;;  %v1500_v59 = vld [vmem:[%s2159_s7 + $0x40] sm:$0xf] }
  0x37   : > { %1188 = vmatpush.bf16.msra.mxu3 %v1681_v38  ;;  %v1740_v60 = vld [vmem:[%s2159_s7 + $0x4c] sm:$0xf0]  ;;  %v1628_v61 = vld [vmem:[%s2159_s7 + $0x140] sm:$0xf]  ;;  %v1649_v62 = vor.u32 %v1774_v54, %v1646_v55  ;;  %v1738_v0 = vld [vmem:[%s2159_s7 + $0x44] sm:$0xf] }
  0x38   : > { %1147 = vmatpush.bf16.msra.mxu0 %v1533_v44  ;;  %v1772_v63 = vld [vmem:[%s2159_s7 + $0x14c] sm:$0xf0]  ;;  %v1502_v1 = vld [vmem:[%s2159_s7 + $0x50] sm:$0xf0]  ;;  %v1770_v2 = vld [vmem:[%s2159_s7 + $0x144] sm:$0xf]  ;;  %v1501_v4 = vor.u32 %v1740_v60, %v1500_v59 }
  0x39   : > { %1161 = vmatpush.bf16.msra.mxu1 %v1661_v45  ;;  %v1630_v3 = vld [vmem:[%s2159_s7 + $0x150] sm:$0xf0]  ;;  %v1629_v5 = vor.u32 %v1772_v63, %v1628_v61  ;;  %v1505_v6 = vor.u32 %v1738_v0, %v1502_v1  ;;  %v1484_v7 = vld [vmem:[%s2159_s7 + $0x20] sm:$0xf]  ;;  %v1736_v8 = vld [vmem:[%s2159_s7 + $0x2c] sm:$0xf0] }
  0x3a   : > { %1175 = vmatpush.bf16.msra.mxu2 %v1537_v46  ;;  %v1612_v9 = vld [vmem:[%s2159_s7 + $0x120] sm:$0xf]  ;;  %v1633_v10 = vor.u32 %v1770_v2, %v1630_v3  ;;  %v1768_v11 = vld [vmem:[%s2159_s7 + $0x12c] sm:$0xf0]  ;;  %v1734_v12 = vld [vmem:[%s2159_s7 + $0x24] sm:$0xf]  ;;  %v1485_v16 = vor.u32 %v1736_v8, %v1484_v7 }
  0x3b   : > { %1189 = vmatpush.bf16.msra.mxu3 %v1665_v50  ;;  %v1486_v13 = vld [vmem:[%s2159_s7 + $0x30] sm:$0xf0]  ;;  %v1766_v14 = vld [vmem:[%s2159_s7 + $0x124] sm:$0xf]  ;;  %v1468_v17 = vld [vmem:[%s2159_s7] sm:$0xf]  ;;  %v1613_v20 = vor.u32 %v1768_v11, %v1612_v9 }
  0x3c   : > { %1148 = vmatpush.bf16.msra.mxu0 %v1517_v56  ;;  %v1614_v15 = vld [vmem:[%s2159_s7 + $0x130] sm:$0xf0]  ;;  %v1732_v18 = vld [vmem:[%s2159_s7 + $0xc] sm:$0xf0]  ;;  %v1596_v19 = vld [vmem:[%s2159_s7 + $0x100] sm:$0xf]  ;;  %v1489_v21 = vor.u32 %v1734_v12, %v1486_v13 }
  0x3d   : > { %1162 = vmatpush.bf16.msra.mxu1 %v1645_v57  ;;  %v1764_v22 = vld [vmem:[%s2159_s7 + $0x10c] sm:$0xf0]  ;;  %v1730_v23 = vld [vmem:[%s2159_s7 + $0x4] sm:$0xf]  ;;  %v1470_v24 = vld [vmem:[%s2159_s7 + $0x10] sm:$0xf0]  ;;  %v1617_v25 = vor.u32 %v1766_v14, %v1614_v15  ;;  %v1469_v32 = vor.u32 %v1732_v18, %v1468_v17 }
  0x3e   : > { %1176 = vmatpush.bf16.msra.mxu2 %v1521_v58  ;;  %v1762_v26 = vld [vmem:[%s2159_s7 + $0x104] sm:$0xf]  ;;  %v1598_v27 = vld [vmem:[%s2159_s7 + $0x110] sm:$0xf0]  ;;  %v1588_v28 = vld [vmem:[%s2159_s7 + $0xe8] sm:$0xf]  ;;  %v1597_v36 = vor.u32 %v1764_v22, %v1596_v19  ;;  %v1473_v37 = vor.u32 %v1730_v23, %v1470_v24 }
  0x3f   : > { %1190 = vmatpush.bf16.msra.mxu3 %v1649_v62  ;;  %v1761_v29 = vld [vmem:[%s2159_s7 + $0xf4] sm:$0xf0]  ;;  %v1716_v30 = vld [vmem:[%s2159_s7 + $0x1e8] sm:$0xf]  ;;  %v1759_v33 = vld [vmem:[%s2159_s7 + $0xec] sm:$0xf]  ;;  %v1601_v41 = vor.u32 %v1762_v26, %v1598_v27 }
  0x40   : > { %1149 = vmatpush.bf16.msra.mxu0 %v1501_v4  ;;  %v1793_v31 = vld [vmem:[%s2159_s7 + $0x1f4] sm:$0xf0]  ;;  %v1590_v34 = vld [vmem:[%s2159_s7 + $0xf8] sm:$0xf0]  ;;  %v1791_v35 = vld [vmem:[%s2159_s7 + $0x1ec] sm:$0xf]  ;;  %v1589_v42 = vor.u32 %v1761_v29, %v1588_v28 }
  0x41   : > { %1163 = vmatpush.bf16.msra.mxu1 %v1629_v5  ;;  %v1718_v38 = vld [vmem:[%s2159_s7 + $0x1f8] sm:$0xf0]  ;;  %v1460_v39 = vld [vmem:[#allocation4] sm:$0xf]  ;;  %v1729_v40 = vld [vmem:[#allocation4 + $0x4] sm:$0xf0]  ;;  %v1717_v45 = vor.u32 %v1793_v31, %v1716_v30  ;;  %v1593_v46 = vor.u32 %v1759_v33, %v1590_v34 }
  0x42   : > { %1177 = vmatpush.bf16.msra.mxu2 %v1505_v6  ;;  %v1728_v43 = vld [vmem:[#allocation4 + $0x4] sm:$0xf]  ;;  %v1462_v44 = vld [vmem:[#allocation4 + $0x8] sm:$0xf0]  ;;  %v1572_v47 = vld [vmem:[%s2159_s7 + $0xc8] sm:$0xf]  ;;  %v1721_v50 = vor.u32 %v1791_v35, %v1718_v38  ;;  %v2243_v54 = vor.u32 %v1729_v40, %v1460_v39 }
  0x43   : > { %1191 = vmatpush.bf16.msra.mxu3 %v1633_v10  ;;  %v1757_v48 = vld [vmem:[%s2159_s7 + $0xd4] sm:$0xf0]  ;;  %v1700_v49 = vld [vmem:[%s2159_s7 + $0x1c8] sm:$0xf]  ;;  %v1755_v52 = vld [vmem:[%s2159_s7 + $0xcc] sm:$0xf]  ;;  %v2247_v57 = vor.u32 %v1728_v43, %v1462_v44 }
  0x44   : > { %1150 = vmatpush.bf16.msra.mxu0 %v1485_v16  ;;  %v1789_v51 = vld [vmem:[%s2159_s7 + $0x1d4] sm:$0xf0]  ;;  %v1574_v53 = vld [vmem:[%s2159_s7 + $0xd8] sm:$0xf0]  ;;  %v1787_v55 = vld [vmem:[%s2159_s7 + $0x1cc] sm:$0xf]  ;;  %v1573_v58 = vor.u32 %v1757_v48, %v1572_v47 }
  0x45   : > { %1164 = vmatpush.bf16.msra.mxu1 %v1613_v20  ;;  %v1702_v56 = vld [vmem:[%s2159_s7 + $0x1d8] sm:$0xf0]  ;;  %v1701_v59 = vor.u32 %v1789_v51, %v1700_v49  ;;  %v1577_v60 = vor.u32 %v1755_v52, %v1574_v53  ;;  %v1556_v61 = vld [vmem:[%s2159_s7 + $0xa8] sm:$0xf]  ;;  %v1753_v62 = vld [vmem:[%s2159_s7 + $0xb4] sm:$0xf0] }
  0x46   : > { %1178 = vmatpush.bf16.msra.mxu2 %v1489_v21  ;;  %v1684_v63 = vld [vmem:[%s2159_s7 + $0x1a8] sm:$0xf]  ;;  %v1705_v0 = vor.u32 %v1787_v55, %v1702_v56  ;;  %v1785_v1 = vld [vmem:[%s2159_s7 + $0x1b4] sm:$0xf0]  ;;  %v1751_v2 = vld [vmem:[%s2159_s7 + $0xac] sm:$0xf]  ;;  %v1557_v6 = vor.u32 %v1753_v62, %v1556_v61 }
  0x47   : > { %1192 = vmatpush.bf16.msra.mxu3 %v1617_v25  ;;  %v1558_v3 = vld [vmem:[%s2159_s7 + $0xb8] sm:$0xf0]  ;;  %v1783_v4 = vld [vmem:[%s2159_s7 + $0x1ac] sm:$0xf]  ;;  %v1685_v7 = vor.u32 %v1785_v1, %v1684_v63  ;;  %v1540_v9 = vld [vmem:[%s2159_s7 + $0x88] sm:$0xf] }
  0x48   : > { %1151 = vmatpush.bf16.msra.mxu0 %v1469_v32  ;;  %v1686_v5 = vld [vmem:[%s2159_s7 + $0x1b8] sm:$0xf0]  ;;  %v1561_v8 = vor.u32 %v1751_v2, %v1558_v3  ;;  %v1749_v10 = vld [vmem:[%s2159_s7 + $0x94] sm:$0xf0]  ;;  %v1668_v11 = vld [vmem:[%s2159_s7 + $0x188] sm:$0xf] }
  0x49   : > { %1165 = vmatpush.bf16.msra.mxu1 %v1597_v36  ;;  %v1689_v12 = vor.u32 %v1783_v4, %v1686_v5  ;;  %v1781_v13 = vld [vmem:[%s2159_s7 + $0x194] sm:$0xf0]  ;;  %v1747_v14 = vld [vmem:[%s2159_s7 + $0x8c] sm:$0xf]  ;;  %v1542_v15 = vld [vmem:[%s2159_s7 + $0x98] sm:$0xf0]  ;;  %v1541_v18 = vor.u32 %v1749_v10, %v1540_v9 }
  0x4a   : > { %1179 = vmatpush.bf16.msra.mxu2 %v1473_v37  ;;  %v1779_v16 = vld [vmem:[%s2159_s7 + $0x18c] sm:$0xf]  ;;  %v1670_v17 = vld [vmem:[%s2159_s7 + $0x198] sm:$0xf0]  ;;  %v1669_v19 = vor.u32 %v1781_v13, %v1668_v11  ;;  %v1545_v20 = vor.u32 %v1747_v14, %v1542_v15  ;;  %v1524_v21 = vld [vmem:[%s2159_s7 + $0x68] sm:$0xf] }
  0x4b   : > { %1193 = vmatpush.bf16.msra.mxu3 %v1601_v41  ;;  %1152 = vmatmul.bf16.vlgmr.msra.gmra.mxu0 %v2243_v54  ;;  %v1745_v22 = vld [vmem:[%s2159_s7 + $0x74] sm:$0xf0]  ;;  %v1652_v23 = vld [vmem:[%s2159_s7 + $0x168] sm:$0xf]  ;;  %v1673_v24 = vor.u32 %v1779_v16, %v1670_v17  ;;  %v1743_v26 = vld [vmem:[%s2159_s7 + $0x6c] sm:$0xf] }
  0x4c   : > { %1200 = vmatpush.bf16.msrb.mxu0 %v1589_v42  ;;  %1166 = vmatmul.bf16.vlgmr.msra.gmra.mxu1 %v2247_v57  ;;  %v1777_v25 = vld [vmem:[%s2159_s7 + $0x174] sm:$0xf0]  ;;  %v1526_v27 = vld [vmem:[%s2159_s7 + $0x78] sm:$0xf0]  ;;  %v1775_v28 = vld [vmem:[%s2159_s7 + $0x16c] sm:$0xf]  ;;  %v1525_v30 = vor.u32 %v1745_v22, %v1524_v21 }
  0x4d   : > { %1214 = vmatpush.bf16.msrb.mxu1 %v1717_v45  ;;  %1180 = vmatmul.bf16.vlgmr.msra.gmra.mxu2 %v2243_v54  ;;  %v1654_v29 = vld [vmem:[%s2159_s7 + $0x178] sm:$0xf0]  ;;  %v1653_v31 = vor.u32 %v1777_v25, %v1652_v23  ;;  %v1529_v32 = vor.u32 %v1743_v26, %v1526_v27  ;;  %v1508_v33 = vld [vmem:[%s2159_s7 + $0x48] sm:$0xf]  ;;  %v1741_v34 = vld [vmem:[%s2159_s7 + $0x54] sm:$0xf0] }
  0x4e   : > { %1228 = vmatpush.bf16.msrb.mxu2 %v1593_v46  ;;  %1194 = vmatmul.bf16.vlgmr.msra.gmra.mxu3 %v2247_v57  ;;  %v1636_v35 = vld [vmem:[%s2159_s7 + $0x148] sm:$0xf]  ;;  %v1657_v36 = vor.u32 %v1775_v28, %v1654_v29  ;;  %v1773_v37 = vld [vmem:[%s2159_s7 + $0x154] sm:$0xf0]  ;;  %v1739_v38 = vld [vmem:[%s2159_s7 + $0x4c] sm:$0xf]  ;;  %v1509_v42 = vor.u32 %v1741_v34, %v1508_v33 }
  0x4f   : > { %1242 = vmatpush.bf16.msrb.mxu3 %v1721_v50  ;;  %v1510_v39 = vld [vmem:[%s2159_s7 + $0x58] sm:$0xf0]  ;;  %v1771_v40 = vld [vmem:[%s2159_s7 + $0x14c] sm:$0xf]  ;;  %v1637_v43 = vor.u32 %v1773_v37, %v1636_v35  ;;  %v1492_v45 = vld [vmem:[%s2159_s7 + $0x28] sm:$0xf] }
  0x50   : > { %1201 = vmatpush.bf16.msrb.mxu0 %v1573_v58  ;;  %v1638_v41 = vld [vmem:[%s2159_s7 + $0x158] sm:$0xf0]  ;;  %v1513_v44 = vor.u32 %v1739_v38, %v1510_v39  ;;  %v1737_v46 = vld [vmem:[%s2159_s7 + $0x34] sm:$0xf0]  ;;  %v1620_v47 = vld [vmem:[%s2159_s7 + $0x128] sm:$0xf] }
  0x51   : > { %1215 = vmatpush.bf16.msrb.mxu1 %v1701_v59  ;;  %v1641_v48 = vor.u32 %v1771_v40, %v1638_v41  ;;  %v1769_v49 = vld [vmem:[%s2159_s7 + $0x134] sm:$0xf0]  ;;  %v1735_v50 = vld [vmem:[%s2159_s7 + $0x2c] sm:$0xf]  ;;  %v1494_v51 = vld [vmem:[%s2159_s7 + $0x38] sm:$0xf0]  ;;  %v1493_v55 = vor.u32 %v1737_v46, %v1492_v45 }
  0x52   : > { %1229 = vmatpush.bf16.msrb.mxu2 %v1577_v60  ;;  %v1767_v52 = vld [vmem:[%s2159_s7 + $0x12c] sm:$0xf]  ;;  %v1622_v53 = vld [vmem:[%s2159_s7 + $0x138] sm:$0xf0]  ;;  %v1621_v56 = vor.u32 %v1769_v49, %v1620_v47  ;;  %v1497_v58 = vor.u32 %v1735_v50, %v1494_v51  ;;  %v1476_v59 = vld [vmem:[%s2159_s7 + $0x8] sm:$0xf] }
  0x53   : > { %1243 = vmatpush.bf16.msrb.mxu3 %v1705_v0  ;;  %v1733_v60 = vld [vmem:[%s2159_s7 + $0x14] sm:$0xf0]  ;;  %v1604_v61 = vld [vmem:[%s2159_s7 + $0x108] sm:$0xf]  ;;  %v1625_v62 = vor.u32 %v1767_v52, %v1622_v53  ;;  %v1731_v0 = vld [vmem:[%s2159_s7 + $0xc] sm:$0xf] }
  0x54   : > { %1202 = vmatpush.bf16.msrb.mxu0 %v1557_v6  ;;  %v1765_v63 = vld [vmem:[%s2159_s7 + $0x114] sm:$0xf0]  ;;  %v1478_v1 = vld [vmem:[%s2159_s7 + $0x18] sm:$0xf0]  ;;  %v1763_v2 = vld [vmem:[%s2159_s7 + $0x10c] sm:$0xf]  ;;  %v1477_v4 = vor.u32 %v1733_v60, %v1476_v59 }
  0x55   : > { %1216 = vmatpush.bf16.msrb.mxu1 %v1685_v7  ;;  %v1606_v3 = vld [vmem:[%s2159_s7 + $0x118] sm:$0xf0]  ;;  %v1605_v5 = vor.u32 %v1765_v63, %v1604_v61  ;;  %v1481_v6 = vor.u32 %v1731_v0, %v1478_v1  ;;  %v2309_v9 = vld [vmem:[%s2159_s7 + $0x8] sm:$0xff]  ;;  %v2312_v10 = vld [vmem:[%s2159_s7 + $0x10] sm:$0xff]  ;;  %vm729_vm2 = vcmask 1042434   ;;  %vm731_vm3 = vcmask 1041408  }
  0x56   : > { %1230 = vmatpush.bf16.msrb.mxu2 %v1561_v8  ;;  %v1609_v7 = vor.u32 %v1763_v2, %v1606_v3  ;;  %v2306_v8 = vld [vmem:[%s2159_s7] sm:$0xff]  ;;  %v2315_v11 = vld [vmem:[%s2159_s7 + $0x18] sm:$0xff]  ;;  %v2321_v13 = vld [vmem:[%s2159_s7 + $0x28] sm:$0xff]  ;;  %v317_v16 = vunpack.c.l.bf16 %v2309_v9  ;;  %v320_v21 = vunpack.c.h.bf16 %v2312_v10  ;;  %s1457_s17 = sshll.u32 %s2155_s30, 6  ;;  %s1794_s19 = sshll.u32 %s2017_s12, 5 }
  0x57   : > { %1244 = vmatpush.bf16.msrb.mxu3 %v1689_v12  ;;  %v2318_v12 = vld [vmem:[%s2159_s7 + $0x20] sm:$0xff]  ;;  %v2324_v14 = vld [vmem:[%s2159_s7 + $0x30] sm:$0xff]  ;;  %v2327_v15 = vld [vmem:[%s2159_s7 + $0x38] sm:$0xff]  ;;  %v321_v22 = vunpack.c.l.bf16 %v2315_v11  ;;  %v322_v25 = vunpack.c.h.bf16 %v2315_v11  ;;  %v325_v28 = vunpack.c.l.bf16 %v2321_v13  ;;  %s1335_s16 = scalar_lea.hbm %s3238_s2, %s1794_s19  ;;  %s219_s21 = scalar_lea.vmem [#allocation9], %s1457_s17 }
  0x58   : > { %1203 = vmatpush.bf16.msrb.mxu0 %v1541_v18  ;;  %v2333_v17 = vld [vmem:[%s2159_s7 + $0x40] sm:$0xff]  ;;  %v2336_v18 = vld [vmem:[%s2159_s7 + $0x48] sm:$0xff]  ;;  %v2343_v23 = vld [vmem:[%s2159_s7 + $0x50] sm:$0xff]  ;;  %v323_v26 = vunpack.c.l.bf16 %v2318_v12  ;;  %v324_v27 = vunpack.c.h.bf16 %v2318_v12  ;;  %v328_v33 = vunpack.c.h.bf16 %v2324_v14  ;;  %v329_v34 = vunpack.c.l.bf16 %v2327_v15  ;;  %s1336_s22 = sshll.u32 %s219_s21, 4  ;;  %s1338_s12 = sshll.u32 %s1335_s16, 4  ;;  %s1337_s22 = int_to_ptr.vmem [resolvable:$true] %s1336_s22  ;;  %s1339_s12 = int_to_ptr.hbm [resolvable:$true] %s1338_s12 }
  0x59   : > { %1217 = vmatpush.bf16.msrb.mxu1 %v1669_v19  ;;  %v318_v19 = vunpack.c.h.bf16 %v2309_v9  ;;  %v2353_v29 = vld [vmem:[%s2159_s7 + $0x60] sm:$0xff]  ;;  %v2363_v35 = vld [vmem:[%s2159_s7 + $0x70] sm:$0xff]  ;;  %v330_v37 = vunpack.c.h.bf16 %v2327_v15  ;;  %v331_v38 = vunpack.c.l.bf16 %v2333_v17  ;;  %v332_v39 = vunpack.c.h.bf16 %v2333_v17  ;;  %v2400_v60 = vld [vmem:[%s2159_s7 + $0xa8] sm:$0xff]  ;;  %s1321_s23 = scalar_lea.sflag [#allocation6], %s2155_s30  ;;  %s1953_s25 = sshra.s32 %s1339_s12, 4  ;;  %s1954_s25 = int_to_ptr.hbm [resolvable:$true] %s1953_s25 }
  0x5a   : > { %1231 = vmatpush.bf16.msrb.mxu2 %v1545_v20  ;;  %v319_v20 = vunpack.c.l.bf16 %v2312_v10  ;;  %v333_v40 = vunpack.c.l.bf16 %v2336_v18  ;;  %v2373_v41 = vld [vmem:[%s2159_s7 + $0x80] sm:$0xff]  ;;  %v336_v45 = vunpack.c.h.bf16 %v2343_v23  ;;  %v2383_v47 = vld [vmem:[%s2159_s7 + $0x90] sm:$0xff]  ;;  %v339_v50 = vunpack.c.l.bf16 %v2353_v29  ;;  %v2433_v2 = vld [vmem:[%s2159_s7 + $0xc8] sm:$0xff]  ;;  %s1955_s18 = scalar_lea.hbm %s1954_s25, 64  ;;  %s1959_s28 = scalar_lea.hbm %s3238_s2, 128 }
  0x5b   : > { %1245 = vmatpush.bf16.msrb.mxu3 %v1673_v24  ;;  %v2346_v24 = vld [vmem:[%s2159_s7 + $0x58] sm:$0xff]  ;;  %v340_v51 = vunpack.c.h.bf16 %v2353_v29  ;;  %v2397_v59 = vld [vmem:[%s2159_s7 + $0xa0] sm:$0xff]  ;;  %v347_v1 = vunpack.c.l.bf16 %v2373_v41  ;;  %v2420_v9 = vmul.f32 %v317_v16, %v317_v16  ;;  %v2422_v10 = vmul.f32 %v318_v19, %v318_v19  ;;  %v2448_v0 = vld [vmem:[%s2159_s7 + $0xd0] sm:$0xff]  ;;  %p1956_p1 = scmp.ne.s32.totalorder %s1954_s25, %s1955_s18  ;;  %p1960_p10 = scmp.lt.s32.totalorder %s1954_s25, %s3238_s2 }
  0x5c   : > { %1204 = vmatpush.bf16.msrb.mxu0 %v1525_v30  ;;  %v2356_v30 = vld [vmem:[%s2159_s7 + $0x68] sm:$0xff]  ;;  %v337_v46 = vunpack.c.l.bf16 %v2346_v24  ;;  %v338_v49 = vunpack.c.h.bf16 %v2346_v24  ;;  %v2430_v3 = vld [vmem:[%s2159_s7 + $0xc0] sm:$0xff]  ;;  %v2436_v16 = vmul.f32 %v320_v21, %v320_v21  ;;  %v2440_v19 = vmul.f32 %v322_v25, %v322_v25  ;;  %v2451_v63 = vld [vmem:[%s2159_s7 + $0xd8] sm:$0xff]  ;;  %p1961_p12 = scmp.lt.s32.totalorder %s1959_s28, %s1955_s18 }
  0x5d   : > { %1218 = vmatpush.bf16.msrb.mxu1 %v1653_v31  ;;  %v326_v31 = vunpack.c.h.bf16 %v2321_v13  ;;  %v341_v52 = vunpack.c.l.bf16 %v2356_v30  ;;  %v342_v53 = vunpack.c.h.bf16 %v2356_v30  ;;  %v2445_v11 = vmul.f32 %v323_v26, %v323_v26  ;;  %v2469_v21 = vld [vmem:[%s2159_s7 + $0xe0] sm:$0xff]  ;;  %v2502_v13 = vld [vmem:[%s2159_s7 + $0xf8] sm:$0xff]  ;;  %v2588_v15 = vld [vmem:[%s2159_s7 + $0x128] sm:$0xff]  ;;  %p1957_p4 = pnand %p1956_p1, %p2131_p5 }
  0x5e   : > { %1232 = vmatpush.bf16.msrb.mxu2 %v1529_v32  ;;  %v327_v32 = vunpack.c.l.bf16 %v2324_v14  ;;  %v2483_v26 = vmul.f32 %v329_v34, %v329_v34  ;;  %v2499_v34 = vld [vmem:[%s2159_s7 + $0xf0] sm:$0xff]  ;;  %v2513_v14 = vmul.f32 %v333_v40, %v333_v40  ;;  %v2529_v40 = vld [vmem:[%s2159_s7 + $0x100] sm:$0xff]  ;;  %v2543_v17 = vmul.f32 %v337_v46, %v337_v46  ;;  %3267 = vst [vmem:[#allocation16_spill] sm:$0xff] %v2588_v15  ;;  %p1962_p13 = por %p1961_p12, %p1960_p10 }
  0x5f   : > { %1246 = vmatpush.bf16.msrb.mxu3 %v1657_v36  ;;  %v2366_v36 = vld [vmem:[%s2159_s7 + $0x78] sm:$0xff]  ;;  %v2458_v25 = vmul.f32 %v326_v31, %v326_v31  ;;  %v2478_v31 = vmul.f32 %v328_v33, %v328_v33  ;;  %v2496_v33 = vmul.f32 %v331_v38, %v331_v38  ;;  %v2563_v24 = vmul.f32 %v339_v50, %v339_v50  ;;  %p1958_p8 = pneg %p1957_p4 }
  0x60   : > { %1205 = vmatpush.bf16.msrb.mxu0 %v1509_v42  ;;  %v2376_v42 = vld [vmem:[%s2159_s7 + $0x88] sm:$0xff]  ;;  %v346_v61 = vunpack.c.h.bf16 %v2366_v36  ;;  %v2466_v12 = vmul.f32 %v327_v32, %v327_v32  ;;  %v2488_v32 = vmul.f32 %v330_v37, %v330_v37  ;;  %v2508_v37 = vmul.f32 %v332_v39, %v332_v39  ;;  %v2618_v50 = vld [vmem:[%s2159_s7 + $0x138] sm:$0xff] }
  0x61   : > { %1219 = vmatpush.bf16.msrb.mxu1 %v1637_v43  ;;  %v334_v43 = vunpack.c.h.bf16 %v2336_v18  ;;  %v2568_v46 = vmul.f32 %v340_v51, %v340_v51  ;;  %v2585_v18 = vld [vmem:[%s2159_s7 + $0x120] sm:$0xff]  ;;  %3269 = vst [vmem:[#allocation18_spill] sm:$0xff] %v2618_v50  ;;  %v3273_v29 = vunpack.c.l.bf16 %v2376_v42  ;;  %v3288_v15 = vunpack.c.l.bf16 %v2400_v60  ;;  %p1963_p0 = pnand %p1962_p13, %p1958_p8 }
  0x62   : > { %1233 = vmatpush.bf16.msrb.mxu2 %v1513_v44  ;;  %v335_v44 = vunpack.c.l.bf16 %v2343_v23  ;;  %3266 = vst [vmem:[#allocation15_spill] sm:$0xff] %v2585_v18  ;;  %v2608_v51 = vmul.f32 %v346_v61, %v346_v61  ;;  %v2615_v23 = vld [vmem:[%s2159_s7 + $0x130] sm:$0xff] }
  0x63   : > { %1247 = vmatpush.bf16.msrb.mxu3 %v1641_v48  ;;  %v2386_v48 = vld [vmem:[%s2159_s7 + $0x98] sm:$0xff]  ;;  %v2518_v38 = vmul.f32 %v334_v43, %v334_v43  ;;  %v2538_v43 = vmul.f32 %v336_v45, %v336_v45  ;;  %v2578_v45 = vmul.f32 %v342_v53, %v342_v53  ;;  %3268 = vst [vmem:[#allocation17_spill] sm:$0xff] %v2615_v23  ;;  %v3295_v23 = vunpack.c.l.bf16 %v2430_v3 }
  0x64   : > { %1206 = vmatpush.bf16.msrb.mxu0 %v1493_v55  ;;  %v343_v55 = vunpack.c.l.bf16 %v2363_v35  ;;  %v2526_v39 = vmul.f32 %v335_v44, %v335_v44  ;;  %v2548_v44 = vmul.f32 %v338_v49, %v338_v49  ;;  %v2573_v49 = vmul.f32 %v341_v52, %v341_v52 }
  0x65   : > { %1220 = vmatpush.bf16.msrb.mxu1 %v1621_v56  ;;  %v344_v56 = vunpack.c.h.bf16 %v2363_v35  ;;  %v2633_v35 = vmul.f32 %v3273_v29, %v3273_v29  ;;  %v3278_v29 = vunpack.c.l.bf16 %v2383_v47 }
  0x66   : > { %1234 = vmatpush.bf16.msrb.mxu2 %v1497_v58  ;;  %v345_v58 = vunpack.c.l.bf16 %v2366_v36  ;;  %v2593_v30 = vmul.f32 %v343_v55, %v343_v55  ;;  %v2623_v36 = vmul.f32 %v347_v1, %v347_v1 }
  0x67   : > { %1248 = vmatpush.bf16.msrb.mxu3 %v1625_v62  ;;  %v2558_v62 = vld [vmem:[%s2159_s7 + $0x118] sm:$0xff]  ;;  %v2598_v52 = vmul.f32 %v344_v56, %v344_v56  ;;  %v3274_v56 = vunpack.c.h.bf16 %v2376_v42  ;;  %v2653_v42 = vmul.f32 %v3278_v29, %v3278_v29 }
  0x68   : > { %1207 = vmatpush.bf16.msrb.mxu0 %v1477_v4  ;;  %3265 = vst [vmem:[#allocation14_spill] sm:$0xff] %v2558_v62  ;;  %v2603_v53 = vmul.f32 %v345_v58, %v345_v58  ;;  %v3271_v58 = vunpack.c.h.bf16 %v2373_v41  ;;  %v3281_v62 = vunpack.c.l.bf16 %v2386_v48 }
  0x69   : > { %1221 = vmatpush.bf16.msrb.mxu1 %v1605_v5  ;;  %v2412_v5 = vld [vmem:[%s2159_s7 + $0xb0] sm:$0xff]  ;;  %3270 = vst [vmem:[#allocation19_spill] sm:$0xff] %v2623_v36  ;;  %v2638_v55 = vmul.f32 %v3274_v56, %v3274_v56  ;;  %v2648_v36 = vld [vmem:[%s2159_s7 + $0x148] sm:$0xff]  ;;  %v3279_v56 = vunpack.c.h.bf16 %v2383_v47  ;;  %v2693_v47 = vmul.f32 %v3288_v15, %v3288_v15 }
  0x6a   : > { %1235 = vmatpush.bf16.msrb.mxu2 %v1481_v6  ;;  %v2415_v6 = vld [vmem:[%s2159_s7 + $0xb8] sm:$0xff]  ;;  %v2628_v61 = vmul.f32 %v3271_v58, %v3271_v58  ;;  %3277 = vst [vmem:[#allocation23_spill] sm:$0xff] %v2648_v36  ;;  %v2663_v41 = vmul.f32 %v3281_v62, %v3281_v62  ;;  %v3282_v58 = vunpack.c.h.bf16 %v2386_v48  ;;  %v3285_v62 = vunpack.c.l.bf16 %v2397_v59 }
  0x6b   : > { %1249 = vmatpush.bf16.msrb.mxu3 %v1609_v7  ;;  %1208 = vmatmul.bf16.vlgmr.msrb.gmra.mxu0 %v2243_v54  ;;  %v2438_v7 = vmul.f32 %v321_v22, %v321_v22  ;;  %v2454_v22 = vmul.f32 %v324_v27, %v324_v27  ;;  %v2472_v27 = vld [vmem:[%s2159_s7 + $0xe8] sm:$0xff]  ;;  %3275 = vst [vmem:[#allocation21_spill] sm:$0xff] %v2638_v55  ;;  %v3291_v15 = vunpack.c.l.bf16 %v2412_v5  ;;  %v3299_v36 = vunpack.c.l.bf16 %v2433_v2 }
  0x6c   : > { %1222 = vmatmul.bf16.vlgmr.msrb.gmra.mxu1 %v2247_v57  ;;  %3272 = vst [vmem:[#allocation20_spill] sm:$0xff] %v2628_v61  ;;  %v2645_v61 = vld [vmem:[%s2159_s7 + $0x140] sm:$0xff]  ;;  %v2658_v55 = vmul.f32 %v3279_v56, %v3279_v56  ;;  %v2668_v1 = vmul.f32 %v3282_v58, %v3282_v58  ;;  %v2683_v48 = vmul.f32 %v3285_v62, %v3285_v62  ;;  %v3286_v58 = vunpack.c.h.bf16 %v2397_v59 }
  0x6d   : > { %1236 = vmatmul.bf16.vlgmr.msrb.gmra.mxu2 %v2243_v54  ;;  %v315_v54 = vunpack.c.l.bf16 %v2306_v8  ;;  %3276 = vst [vmem:[#allocation22_spill] sm:$0xff] %v2645_v61  ;;  %v3290_v56 = vunpack.c.h.bf16 %v2400_v60  ;;  %v3292_v60 = vunpack.c.h.bf16 %v2412_v5  ;;  %v3293_v62 = vunpack.c.l.bf16 %v2415_v6 }
  0x6e   : > { %1250 = vmatmul.bf16.vlgmr.msrb.gmra.mxu3 %v2247_v57  ;;  %v316_v57 = vunpack.c.h.bf16 %v2306_v8  ;;  %3280 = vst [vmem:[#allocation24_spill] sm:$0xff] %v2658_v55  ;;  %v2678_v55 = vld [vmem:[%s2159_s7 + $0x158] sm:$0xff]  ;;  %v3294_v59 = vunpack.c.h.bf16 %v2415_v6  ;;  %v3297_v6 = vunpack.c.h.bf16 %v2430_v3  ;;  %v2747_v61 = vmul.f32 %v3299_v36, %v3299_v36 }
  0x6f   : > { %v2409_v4 = vmul.f32 %v315_v54, %v315_v54  ;;  %v2427_v54 = vmul.f32 %v319_v20, %v319_v20  ;;  %v2532_v20 = vld [vmem:[%s2159_s7 + $0x108] sm:$0xff]  ;;  %3283 = vst [vmem:[#allocation25_spill] sm:$0xff] %v2668_v1  ;;  %v2688_v1 = vmul.f32 %v3286_v58, %v3286_v58  ;;  %v2698_v29 = vmul.f32 %v3290_v56, %v3290_v56  ;;  %v2705_v58 = vld [vmem:[%s2159_s7 + $0x160] sm:$0xff] }
  0x70   : > { %v2418_v8 = vmul.f32 %v316_v57, %v316_v57  ;;  %v2456_v57 = vmul.f32 %v325_v28, %v325_v28  ;;  %v2555_v28 = vld [vmem:[%s2159_s7 + $0x110] sm:$0xff]  ;;  %3284 = vst [vmem:[#allocation26_spill] sm:$0xff] %v2678_v55  ;;  %v2718_v56 = vmul.f32 %v3292_v60, %v3292_v60  ;;  %v2723_v18 = vmul.f32 %v3293_v62, %v3293_v62  ;;  %v2771_v60 = vld [vmem:[%s2159_s7 + $0x178] sm:$0xff] }
  0x71   : > { %3264 = vst [vmem:[#allocation13_spill] sm:$0xff] %v2555_v28  ;;  %v2675_v28 = vld [vmem:[%s2159_s7 + $0x150] sm:$0xff]  ;;  %v2728_v50 = vmul.f32 %v3294_v59, %v3294_v59  ;;  %v2737_v62 = vmul.f32 %v3295_v23, %v3295_v23  ;;  %v2742_v59 = vmul.f32 %v3297_v6, %v3297_v6  ;;  %v243_v6 = vlaneseq }
  0x72   : > { %3287 = vst [vmem:[#allocation27_spill] sm:$0xff] %v2688_v1  ;;  %v2708_v1 = vld [vmem:[%s2159_s7 + $0x168] sm:$0xff]  ;;  %v609_v36 = vadd.f32 %v2436_v16, %v2418_v8  ;;  %v3302_v55 = vunpack.c.h.bf16 %v2448_v0  ;;  %v3303_v23 = vunpack.c.l.bf16 %v2451_v63  ;;  %v683_v8 = vadd.f32 %v2440_v19, %v2422_v10 }
  0x73   : > { %3289 = vst [vmem:[#allocation28_spill] sm:$0xff] %v2693_v47  ;;  %v2713_v47 = vmul.f32 %v3291_v15, %v3291_v15  ;;  %v3300_v15 = vunpack.c.h.bf16 %v2433_v2  ;;  %v572_v2 = vadd.f32 %v2427_v54, %v2409_v4  ;;  %v646_v4 = vadd.f32 %v2438_v7, %v2420_v9 }
  0x74   : > { %3296 = vst [vmem:[#allocation29_spill] sm:$0xff] %v2737_v62  ;;  %v2776_v3 = vmul.f32 %v3302_v55, %v3302_v55  ;;  %vm2787_vm0 = vcmp.lt.s32.totalorder %v243_v6, 512  ;;  %v610_v16 = vadd.f32 %v609_v36, %v2454_v22  ;;  %v2033_v55 = vmov 0.0   ;;  %v2808_v36 = vld [vmem:[%s2159_s7 + $0x180] sm:$0xff] }
  0x75   : > { %3298 = vst [vmem:[#allocation30_spill] sm:$0xff] %v2742_v59  ;;  %v2752_v5 = vmul.f32 %v3300_v15, %v3300_v15  ;;  %v3301_v59 = vunpack.c.l.bf16 %v2448_v0  ;;  %v2768_v15 = vld [vmem:[%s2159_s7 + $0x170] sm:$0xff]  ;;  %v573_v0 = vadd.f32 %v572_v2, %v2445_v11  ;;  %v3306_v7 = vunpack.c.h.bf16 %v2451_v63 }
  0x76   : > { %247 = vst.msk [vmem:[#allocation3] sm:$0xf] %vm2787_vm0, %v2033_v55  ;;  %v647_v10 = vadd.f32 %v646_v4, %v2456_v57  ;;  %v684_v19 = vadd.f32 %v683_v8, %v2458_v25  ;;  %v408_v6 = vunpack.c.h.bf16 %v2768_v15  ;;  %v409_v11 = vunpack.c.l.bf16 %v2771_v60  ;;  %v2811_v55 = vld [vmem:[%s2159_s7 + $0x188] sm:$0xff] }
  0x77   : > { %v2761_v62 = vmul.f32 %v3301_v59, %v3301_v59  ;;  %v2781_v59 = vmul.f32 %v3303_v23, %v3303_v23  ;;  %v403_v23 = vunpack.c.l.bf16 %v2705_v58  ;;  %v2799_v9 = vmul.f32 %v3306_v7, %v3306_v7 }
  0x78   : > { %v574_v22 = vadd.f32 %v573_v0, %v2466_v12  ;;  %v611_v2 = vadd.f32 %v610_v16, %v2478_v31  ;;  %v3307_v7 = vunpack.c.l.bf16 %v2469_v21  ;;  %v648_v25 = vadd.f32 %v647_v10, %v2483_v26 }
  0x79   : > { %v685_v4 = vadd.f32 %v684_v19, %v2488_v32  ;;  %v3308_v12 = vunpack.c.h.bf16 %v2469_v21  ;;  %v3309_v8 = vunpack.c.l.bf16 %v2472_v27  ;;  %v407_v63 = vunpack.c.l.bf16 %v2768_v15 }
  0x7a   : > { %v2817_v57 = vmul.f32 %v3307_v7, %v3307_v7  ;;  %v575_v16 = vadd.f32 %v574_v22, %v2496_v33  ;;  %v612_v7 = vadd.f32 %v611_v2, %v2508_v37  ;;  %v3310_v26 = vunpack.c.h.bf16 %v2472_v27  ;;  %v2846_v37 = vld [vmem:[%s2159_s7 + $0x190] sm:$0xff]  ;;  %v2849_v22 = vld [vmem:[%s2159_s7 + $0x198] sm:$0xff] }
  0x7b   : > { %v2824_v31 = vmul.f32 %v3308_v12, %v3308_v12  ;;  %v2829_v0 = vmul.f32 %v3309_v8, %v3309_v8  ;;  %v649_v21 = vadd.f32 %v648_v25, %v2513_v14  ;;  %v686_v10 = vadd.f32 %v685_v4, %v2518_v38 }
  0x7c   : > { %v2837_v32 = vmul.f32 %v3310_v26, %v3310_v26  ;;  %v576_v8 = vadd.f32 %v575_v16, %v2526_v39  ;;  %v613_v33 = vadd.f32 %v612_v7, %v2538_v43  ;;  %v3311_v2 = vunpack.c.l.bf16 %v2499_v34 }
  0x7d   : > { %v650_v38 = vadd.f32 %v649_v21, %v2543_v17  ;;  %v687_v25 = vadd.f32 %v686_v10, %v2548_v44  ;;  %v3312_v39 = vunpack.c.h.bf16 %v2499_v34  ;;  %v3313_v4 = vunpack.c.l.bf16 %v2502_v13 }
  0x7e   : > { %v2855_v14 = vmul.f32 %v3311_v2, %v3311_v2  ;;  %v577_v7 = vadd.f32 %v576_v8, %v2563_v24  ;;  %v614_v26 = vadd.f32 %v613_v33, %v2568_v46  ;;  %v411_v2 = vunpack.c.l.bf16 %v2808_v36  ;;  %v2884_v46 = vld [vmem:[%s2159_s7 + $0x1a0] sm:$0xff]  ;;  %v2887_v8 = vld [vmem:[%s2159_s7 + $0x1a8] sm:$0xff] }
  0x7f   : > { %v2862_v43 = vmul.f32 %v3312_v39, %v3312_v39  ;;  %v2867_v16 = vmul.f32 %v3313_v4, %v3313_v4  ;;  %v3314_v17 = vunpack.c.h.bf16 %v2502_v13  ;;  %v651_v34 = vadd.f32 %v650_v38, %v2573_v49  ;;  %v3319_v13 = vld [vmem:[#allocation20_spill] sm:$0xff] }
  0x80   : > { %v688_v21 = vadd.f32 %v687_v25, %v2578_v45  ;;  %v578_v4 = vadd.f32 %v577_v7, %v2593_v30  ;;  %v615_v24 = vadd.f32 %v614_v26, %v2598_v52  ;;  %v3315_v33 = vunpack.c.l.bf16 %v2529_v40  ;;  %v3318_v26 = vld [vmem:[#allocation19_spill] sm:$0xff] }
  0x81   : > { %v2875_v44 = vmul.f32 %v3314_v17, %v3314_v17  ;;  %v652_v45 = vadd.f32 %v651_v34, %v2603_v53  ;;  %v3316_v30 = vunpack.c.h.bf16 %v2529_v40  ;;  %v3317_v25 = vunpack.c.l.bf16 %v2532_v20  ;;  %v3321_v34 = vld [vmem:[#allocation21_spill] sm:$0xff] }
  0x82   : > { %v2893_v49 = vmul.f32 %v3315_v33, %v3315_v33  ;;  %v689_v38 = vadd.f32 %v688_v21, %v2608_v51  ;;  %v579_v17 = vadd.f32 %v578_v4, %v3318_v26  ;;  %v616_v33 = vadd.f32 %v615_v24, %v3319_v13  ;;  %v3322_v4 = vld [vmem:[#allocation24_spill] sm:$0xff]  ;;  %v2922_v24 = vld [vmem:[%s2159_s7 + $0x1b0] sm:$0xff] }
  0x83   : > { %v2900_v52 = vmul.f32 %v3316_v30, %v3316_v30  ;;  %v2905_v7 = vmul.f32 %v3317_v25, %v3317_v25  ;;  %v3320_v53 = vunpack.c.h.bf16 %v2532_v20  ;;  %v653_v40 = vadd.f32 %v652_v45, %v2633_v35  ;;  %v2925_v13 = vld [vmem:[%s2159_s7 + $0x1b8] sm:$0xff]  ;;  %v3329_v30 = vld [vmem:[#allocation27_spill] sm:$0xff] }
  0x84   : > { %v690_v21 = vadd.f32 %v689_v38, %v3321_v34  ;;  %v580_v10 = vadd.f32 %v579_v17, %v2653_v42  ;;  %v617_v26 = vadd.f32 %v616_v33, %v3322_v4  ;;  %v3325_v38 = vld [vmem:[#allocation25_spill] sm:$0xff]  ;;  %v3327_v33 = vld [vmem:[#allocation14_spill] sm:$0xff]  ;;  %v423_v19 = vunpack.c.l.bf16 %v2922_v24 }
  0x85   : > { %v2913_v51 = vmul.f32 %v3320_v53, %v3320_v53  ;;  %v3323_v53 = vld [vmem:[#allocation13_spill] sm:$0xff]  ;;  %v654_v45 = vadd.f32 %v653_v40, %v2663_v41  ;;  %v3328_v4 = vunpack.c.l.bf16 %v3327_v33  ;;  %v3330_v41 = vunpack.c.h.bf16 %v3327_v33  ;;  %v3332_v33 = vld [vmem:[#allocation15_spill] sm:$0xff] }
  0x86   : > { %v3324_v39 = vunpack.c.l.bf16 %v3323_v53  ;;  %v691_v34 = vadd.f32 %v690_v21, %v3325_v38  ;;  %v3326_v42 = vunpack.c.h.bf16 %v3323_v53  ;;  %v581_v25 = vadd.f32 %v580_v10, %v2683_v48  ;;  %v3331_v21 = vld [vmem:[#allocation28_spill] sm:$0xff]  ;;  %v2960_v10 = vld [vmem:[%s2159_s7 + $0x1c0] sm:$0xff] }
  0x87   : > { %v2943_v20 = vmul.f32 %v3328_v4, %v3328_v4  ;;  %v2951_v40 = vmul.f32 %v3330_v41, %v3330_v41  ;;  %v655_v53 = vadd.f32 %v654_v45, %v3331_v21  ;;  %v3333_v41 = vunpack.c.l.bf16 %v3332_v33  ;;  %v3337_v4 = vld [vmem:[#allocation29_spill] sm:$0xff] }
  0x88   : > { %v2931_v35 = vmul.f32 %v3324_v39, %v3324_v39  ;;  %v2938_v17 = vmul.f32 %v3326_v42, %v3326_v42  ;;  %v618_v39 = vadd.f32 %v617_v26, %v3329_v30  ;;  %v692_v38 = vadd.f32 %v691_v34, %v2698_v29  ;;  %v2963_v30 = vld [vmem:[%s2159_s7 + $0x1c8] sm:$0xff] }
  0x89   : > { %v582_v12 = vadd.f32 %v581_v25, %v2713_v47  ;;  %v516_v45 = vmul.f32 %v3333_v41, %v3333_v41  ;;  %v656_v29 = vadd.f32 %v655_v53, %v2723_v18  ;;  %v3334_v47 = vunpack.c.h.bf16 %v3332_v33  ;;  %v3335_v25 = vld [vmem:[#allocation16_spill] sm:$0xff]  ;;  %v3338_v42 = vld [vmem:[#allocation30_spill] sm:$0xff] }
  0x8a   : > { %v619_v48 = vadd.f32 %v618_v39, %v2718_v56  ;;  %v693_v34 = vadd.f32 %v692_v38, %v2728_v50  ;;  %v3336_v39 = vunpack.c.l.bf16 %v3335_v25  ;;  %v3339_v41 = vunpack.c.h.bf16 %v3335_v25  ;;  %v3340_v25 = vld [vmem:[#allocation17_spill] sm:$0xff] }
  0x8b   : > { %v517_v56 = vmul.f32 %v3334_v47, %v3334_v47  ;;  %v583_v26 = vadd.f32 %v582_v12, %v3337_v4  ;;  %v657_v50 = vadd.f32 %v656_v29, %v2747_v61  ;;  %v428_v38 = vunpack.c.h.bf16 %v2960_v10  ;;  %v2990_v4 = vld [vmem:[%s2159_s7 + $0x1d0] sm:$0xff] }
  0x8c   : > { %v518_v21 = vmul.f32 %v3336_v39, %v3336_v39  ;;  %v620_v27 = vadd.f32 %v619_v48, %v3338_v42  ;;  %v519_v18 = vmul.f32 %v3339_v41, %v3339_v41  ;;  %v694_v53 = vadd.f32 %v693_v34, %v2752_v5  ;;  %v2993_v42 = vld [vmem:[%s2159_s7 + $0x1d8] sm:$0xff] }
  0x8d   : > { %v584_v47 = vadd.f32 %v583_v26, %v2761_v62  ;;  %v3341_v39 = vunpack.c.l.bf16 %v3340_v25  ;;  %v658_v5 = vadd.f32 %v657_v50, %v2781_v59  ;;  %v3342_v62 = vunpack.c.h.bf16 %v3340_v25 }
  0x8e   : > { %v621_v12 = vadd.f32 %v620_v27, %v2776_v3  ;;  %v695_v29 = vadd.f32 %v694_v53, %v2799_v9  ;;  %v3343_v27 = vld [vmem:[#allocation18_spill] sm:$0xff]  ;;  %v427_v33 = vunpack.c.l.bf16 %v2960_v10  ;;  %v432_v53 = vunpack.c.h.bf16 %v2990_v4 }
  0x8f   : > { %v520_v61 = vmul.f32 %v3341_v39, %v3341_v39  ;;  %v521_v3 = vmul.f32 %v3342_v62, %v3342_v62  ;;  %v3344_v26 = vunpack.c.l.bf16 %v3343_v27  ;;  %v585_v41 = vadd.f32 %v584_v47, %v2817_v57  ;;  %v3020_v47 = vld [vmem:[%s2159_s7 + $0x1e0] sm:$0xff] }
  0x90   : > { %v622_v48 = vadd.f32 %v621_v12, %v2824_v31  ;;  %v3345_v39 = vunpack.c.h.bf16 %v3343_v27  ;;  %v659_v9 = vadd.f32 %v658_v5, %v2829_v0  ;;  %v696_v50 = vadd.f32 %v695_v29, %v2837_v32  ;;  %v3023_v31 = vld [vmem:[%s2159_s7 + $0x1e8] sm:$0xff] }
  0x91   : > { %v522_v34 = vmul.f32 %v3344_v26, %v3344_v26  ;;  %v586_v62 = vadd.f32 %v585_v41, %v2855_v14  ;;  %v3346_v27 = vld [vmem:[#allocation22_spill] sm:$0xff]  ;;  %v431_v25 = vunpack.c.l.bf16 %v2990_v4  ;;  %v3361_v15 = vunpack.c.h.bf16 %v2808_v36 }
  0x92   : > { %v523_v59 = vmul.f32 %v3345_v39, %v3345_v39  ;;  %v623_v57 = vadd.f32 %v622_v48, %v2862_v43  ;;  %v3347_v26 = vunpack.c.l.bf16 %v3346_v27  ;;  %v660_v32 = vadd.f32 %v659_v9, %v2867_v16  ;;  %v3349_v48 = vld [vmem:[#allocation23_spill] sm:$0xff] }
  0x93   : > { %v697_v5 = vadd.f32 %v696_v50, %v2875_v44  ;;  %v3348_v14 = vunpack.c.h.bf16 %v3346_v27  ;;  %v3350_v29 = vunpack.c.l.bf16 %v3349_v48  ;;  %v587_v39 = vadd.f32 %v586_v62, %v2893_v49  ;;  %v3050_v62 = vld [vmem:[%s2159_s7 + $0x1f0] sm:$0xff] }
  0x94   : > { %v524_v0 = vmul.f32 %v3347_v26, %v3347_v26  ;;  %v624_v12 = vadd.f32 %v623_v57, %v2900_v52  ;;  %v3351_v26 = vunpack.c.h.bf16 %v3349_v48  ;;  %v661_v44 = vadd.f32 %v660_v32, %v2905_v7  ;;  %v3053_v52 = vld [vmem:[%s2159_s7 + $0x1f8] sm:$0xff] }
  0x95   : > { %v525_v43 = vmul.f32 %v3348_v14, %v3348_v14  ;;  %v526_v41 = vmul.f32 %v3350_v29, %v3350_v29  ;;  %v698_v9 = vadd.f32 %v697_v5, %v2913_v51  ;;  %v588_v14 = vadd.f32 %v587_v39, %v2931_v35  ;;  %v3354_v29 = vld [vmem:[#allocation26_spill] sm:$0xff] }
  0x96   : > { %v527_v16 = vmul.f32 %v3351_v26, %v3351_v26  ;;  %v625_v49 = vadd.f32 %v624_v12, %v2938_v17  ;;  %v3352_v48 = vunpack.c.l.bf16 %v2675_v28  ;;  %v662_v51 = vadd.f32 %v661_v44, %v2943_v20 }
  0x97   : > { %v699_v32 = vadd.f32 %v698_v9, %v2951_v40  ;;  %v3353_v5 = vunpack.c.h.bf16 %v2675_v28  ;;  %v3355_v17 = vunpack.c.l.bf16 %v3354_v29  ;;  %v589_v39 = vadd.f32 %v588_v14, %v516_v45 }
  0x98   : > { %v528_v7 = vmul.f32 %v3352_v48, %v3352_v48  ;;  %v626_v26 = vadd.f32 %v625_v49, %v517_v56  ;;  %v435_v57 = vunpack.c.l.bf16 %v3020_v47  ;;  %v3356_v27 = vunpack.c.h.bf16 %v3354_v29 }
  0x99   : > { %v529_v35 = vmul.f32 %v3353_v5, %v3353_v5  ;;  %v530_v12 = vmul.f32 %v3355_v17, %v3355_v17  ;;  %v663_v50 = vadd.f32 %v662_v51, %v518_v21  ;;  %v700_v20 = vadd.f32 %v699_v32, %v519_v18 }
  0x9a   : > { %v531_v48 = vmul.f32 %v3356_v27, %v3356_v27  ;;  %v440_v40 = vunpack.c.h.bf16 %v3050_v62  ;;  %v441_v28 = vunpack.c.l.bf16 %v3053_v52  ;;  %v590_v44 = vadd.f32 %v589_v39, %v520_v61 }
  0x9b   : > { %v627_v9 = vadd.f32 %v626_v26, %v521_v3  ;;  %v442_v5 = vunpack.c.h.bf16 %v3053_v52  ;;  %v532_v45 = vmul.f32 %v403_v23, %v403_v23  ;;  %v664_v56 = vadd.f32 %v663_v50, %v522_v34 }
  0x9c   : > { %v701_v14 = vadd.f32 %v700_v20, %v523_v59  ;;  %v3357_v49 = vunpack.c.h.bf16 %v2705_v58  ;;  %v3358_v21 = vunpack.c.l.bf16 %v2708_v1  ;;  %v591_v51 = vadd.f32 %v590_v44, %v524_v0 }
  0x9d   : > { %v628_v32 = vadd.f32 %v627_v9, %v525_v43  ;;  %v439_v61 = vunpack.c.l.bf16 %v3050_v62  ;;  %v3359_v3 = vunpack.c.h.bf16 %v2708_v1  ;;  %v665_v17 = vadd.f32 %v664_v56, %v526_v41 }
  0x9e   : > { %v533_v27 = vmul.f32 %v3357_v49, %v3357_v49  ;;  %v534_v18 = vmul.f32 %v3358_v21, %v3358_v21  ;;  %v702_v23 = vadd.f32 %v701_v14, %v527_v16  ;;  %v536_v58 = vmul.f32 %v407_v63, %v407_v63 }
  0x9f   : > { %v535_v29 = vmul.f32 %v3359_v3, %v3359_v3  ;;  %v537_v34 = vmul.f32 %v408_v6, %v408_v6  ;;  %v592_v59 = vadd.f32 %v591_v51, %v528_v7  ;;  %v629_v50 = vadd.f32 %v628_v32, %v529_v35 }
  0xa0   : > { %v538_v0 = vmul.f32 %v409_v11, %v409_v11  ;;  %v3360_v1 = vunpack.c.h.bf16 %v2771_v60  ;;  %v666_v41 = vadd.f32 %v665_v17, %v530_v12  ;;  %v703_v16 = vadd.f32 %v702_v23, %v531_v48 }
  0xa1   : > { %v540_v63 = vmul.f32 %v411_v2, %v411_v2  ;;  %v541_v6 = vmul.f32 %v3361_v15, %v3361_v15  ;;  %v593_v7 = vadd.f32 %v592_v59, %v532_v45  ;;  %v630_v35 = vadd.f32 %v629_v50, %v533_v27 }
  0xa2   : > { %v539_v43 = vmul.f32 %v3360_v1, %v3360_v1  ;;  %v3362_v39 = vunpack.c.l.bf16 %v2811_v55  ;;  %v3363_v60 = vunpack.c.h.bf16 %v2811_v55  ;;  %v667_v12 = vadd.f32 %v666_v41, %v534_v18 }
  0xa3   : > { %v704_v48 = vadd.f32 %v703_v16, %v535_v29  ;;  %v3364_v20 = vunpack.c.l.bf16 %v2846_v37  ;;  %v3365_v36 = vunpack.c.h.bf16 %v2846_v37  ;;  %v594_v9 = vadd.f32 %v593_v7, %v536_v58 }
  0xa4   : > { %v542_v11 = vmul.f32 %v3362_v39, %v3362_v39  ;;  %v543_v26 = vmul.f32 %v3363_v60, %v3363_v60  ;;  %v631_v45 = vadd.f32 %v630_v35, %v537_v34  ;;  %v3366_v56 = vunpack.c.l.bf16 %v2849_v22 }
  0xa5   : > { %v544_v2 = vmul.f32 %v3364_v20, %v3364_v20  ;;  %v545_v44 = vmul.f32 %v3365_v36, %v3365_v36  ;;  %v3367_v55 = vunpack.c.h.bf16 %v2849_v22  ;;  %v668_v27 = vadd.f32 %v667_v12, %v538_v0 }
  0xa6   : > { %v546_v14 = vmul.f32 %v3366_v56, %v3366_v56  ;;  %v705_v21 = vadd.f32 %v704_v48, %v539_v43  ;;  %v3368_v18 = vunpack.c.l.bf16 %v2884_v46  ;;  %v3369_v37 = vunpack.c.h.bf16 %v2884_v46 }
  0xa7   : > { %v547_v49 = vmul.f32 %v3367_v55, %v3367_v55  ;;  %v595_v3 = vadd.f32 %v594_v9, %v540_v63  ;;  %v632_v29 = vadd.f32 %v631_v45, %v541_v6  ;;  %v3370_v17 = vunpack.c.l.bf16 %v2887_v8 }
  0xa8   : > { %v548_v51 = vmul.f32 %v3368_v18, %v3368_v18  ;;  %v549_v32 = vmul.f32 %v3369_v37, %v3369_v37  ;;  %v3371_v22 = vunpack.c.h.bf16 %v2887_v8  ;;  %v669_v34 = vadd.f32 %v668_v27, %v542_v11 }
  0xa9   : > { %v550_v23 = vmul.f32 %v3370_v17, %v3370_v17  ;;  %v706_v59 = vadd.f32 %v705_v21, %v543_v26  ;;  %v552_v50 = vmul.f32 %v423_v19, %v423_v19  ;;  %v3372_v46 = vunpack.c.h.bf16 %v2922_v24 }
  0xaa   : > { %v551_v58 = vmul.f32 %v3371_v22, %v3371_v22  ;;  %v596_v1 = vadd.f32 %v595_v3, %v544_v2  ;;  %v633_v43 = vadd.f32 %v632_v29, %v545_v44  ;;  %v3373_v41 = vunpack.c.l.bf16 %v2925_v13 }
  0xab   : > { %v553_v0 = vmul.f32 %v3372_v46, %v3372_v46  ;;  %v3374_v8 = vunpack.c.h.bf16 %v2925_v13  ;;  %v670_v15 = vadd.f32 %v669_v34, %v546_v14  ;;  %v707_v6 = vadd.f32 %v706_v59, %v547_v49 }
  0xac   : > { %v554_v16 = vmul.f32 %v3373_v41, %v3373_v41  ;;  %v556_v19 = vmul.f32 %v427_v33, %v427_v33  ;;  %v557_v24 = vmul.f32 %v428_v38, %v428_v38  ;;  %v597_v7 = vadd.f32 %v596_v1, %v548_v51 }
  0xad   : > { %v555_v63 = vmul.f32 %v3374_v8, %v3374_v8  ;;  %v634_v35 = vadd.f32 %v633_v43, %v549_v32  ;;  %v3375_v39 = vunpack.c.l.bf16 %v2963_v30  ;;  %v3376_v13 = vunpack.c.h.bf16 %v2963_v30 }
  0xae   : > { %v671_v26 = vadd.f32 %v670_v15, %v550_v23  ;;  %v708_v12 = vadd.f32 %v707_v6, %v551_v58  ;;  %v560_v33 = vmul.f32 %v431_v25, %v431_v25  ;;  %v561_v10 = vmul.f32 %v432_v53, %v432_v53 }
  0xaf   : > { %v558_v11 = vmul.f32 %v3375_v39, %v3375_v39  ;;  %v559_v60 = vmul.f32 %v3376_v13, %v3376_v13  ;;  %v598_v38 = vadd.f32 %v597_v7, %v552_v50  ;;  %v635_v48 = vadd.f32 %v634_v35, %v553_v0 }
  0xb0   : > { %v3377_v20 = vunpack.c.l.bf16 %v2993_v42  ;;  %v3378_v30 = vunpack.c.h.bf16 %v2993_v42  ;;  %v672_v44 = vadd.f32 %v671_v26, %v554_v16  ;;  %v709_v9 = vadd.f32 %v708_v12, %v555_v63 }
  0xb1   : > { %v564_v25 = vmul.f32 %v435_v57, %v435_v57  ;;  %v3379_v4 = vunpack.c.h.bf16 %v3020_v47  ;;  %v599_v45 = vadd.f32 %v598_v38, %v556_v19  ;;  %v636_v56 = vadd.f32 %v635_v48, %v557_v24 }
  0xb2   : > { %v562_v2 = vmul.f32 %v3377_v20, %v3377_v20  ;;  %v563_v36 = vmul.f32 %v3378_v30, %v3378_v30  ;;  %v3380_v14 = vunpack.c.l.bf16 %v3023_v31  ;;  %v3381_v42 = vunpack.c.h.bf16 %v3023_v31 }
  0xb3   : > { %v565_v53 = vmul.f32 %v3379_v4, %v3379_v4  ;;  %v673_v27 = vadd.f32 %v672_v44, %v558_v11  ;;  %v710_v21 = vadd.f32 %v709_v9, %v559_v60  ;;  %v568_v57 = vmul.f32 %v439_v61, %v439_v61 }
  0xb4   : > { %v566_v55 = vmul.f32 %v3380_v14, %v3380_v14  ;;  %v567_v49 = vmul.f32 %v3381_v42, %v3381_v42  ;;  %v569_v47 = vmul.f32 %v440_v40, %v440_v40  ;;  %v600_v18 = vadd.f32 %v599_v45, %v560_v33 }
  0xb5   : > { %v637_v51 = vadd.f32 %v636_v56, %v561_v10  ;;  %v570_v37 = vmul.f32 %v441_v28, %v441_v28  ;;  %v571_v31 = vmul.f32 %v442_v5, %v442_v5  ;;  %v674_v32 = vadd.f32 %v673_v27, %v562_v2  ;;  %v443_v10 = vld [vmem:[#allocation3] sm:$0xf] }
  0xb6   : > { %v711_v3 = vadd.f32 %v710_v21, %v563_v36  ;;  %v601_v29 = vadd.f32 %v600_v18, %v564_v25 }
  0xb7   : > { %v638_v17 = vadd.f32 %v637_v51, %v565_v53  ;;  %v675_v23 = vadd.f32 %v674_v32, %v566_v55 }
  0xb8   : > { %v712_v61 = vadd.f32 %v711_v3, %v567_v49  ;;  %v602_v22 = vadd.f32 %v601_v29, %v568_v57 }
  0xb9   : > { %v639_v62 = vadd.f32 %v638_v17, %v569_v47  ;;  %v676_v58 = vadd.f32 %v675_v23, %v570_v37 }
  0xba   : > { %v713_v40 = vadd.f32 %v712_v61, %v571_v31  ;;  %v603_v34 = vrot.slane %v602_v22, 4 }
  0xbb   : > { %v640_v59 = vrot.slane %v639_v62, 4  ;;  %v677_v50 = vrot.slane %v676_v58, 4 }
  0xbc   : > { %v714_v46 = vrot.slane %v713_v40, 4  ;;  %v604_v0 = vadd.f32 %v603_v34, %v602_v22 }
  0xbd   : > { %v641_v28 = vadd.f32 %v640_v59, %v639_v62  ;;  %v678_v1 = vadd.f32 %v677_v50, %v676_v58 }
  0xbe   : > { %v715_v52 = vadd.f32 %v714_v46, %v713_v40  ;;  %v605_v43 = vrot.slane %v604_v0, 2 }
  0xbf   : > { %v642_v5 = vrot.slane %v641_v28, 2  ;;  %v679_v41 = vrot.slane %v678_v1, 2 }
  0xc0   : > { %v716_v16 = vrot.slane %v715_v52, 2  ;;  %v606_v8 = vadd.f32 %v605_v43, %v604_v0 }
  0xc1   : > { %v643_v63 = vadd.f32 %v642_v5, %v641_v28  ;;  %v680_v15 = vadd.f32 %v679_v41, %v678_v1 }
  0xc2   : > { %v717_v6 = vadd.f32 %v716_v16, %v715_v52  ;;  %v607_v19 = vrot.slane %v606_v8, 1 }
  0xc3   : > { %v644_v24 = vrot.slane %v643_v63, 1  ;;  %v681_v7 = vrot.slane %v680_v15, 1 }
  0xc4   : > { %v718_v35 = vrot.slane %v717_v6, 1  ;;  %v608_v39 = vadd.f32 %v607_v19, %v606_v8 }
  0xc5   : > { %v645_v11 = vadd.f32 %v644_v24, %v643_v63  ;;  %v682_v13 = vadd.f32 %v681_v7, %v680_v15 }
  0xc6   : > { %v719_v60 = vadd.f32 %v718_v35, %v717_v6 }
  0xc7   : > { %v724_v26 = vrot.slane %v645_v11, 7  ;;  %v725_v12 = vrot.slane %v682_v13, 6 }
  0xc8   : > { %v726_v33 = vrot.slane %v719_v60, 5  ;;  %v1153_v30 = vpop.f32.mrf.mxu0 }
  0xc9   : > { %v728_v38 = vsel %vm727_vm1, %v608_v39, %v724_v26  ;;  %v1167_v36 = vpop.f32.mrf.mxu1 }
  0xca   : > { %v730_v48 = vsel %vm729_vm2, %v725_v12, %v726_v33  ;;  %v1168_v37 = vadd.f32 %v1167_v36, %v1153_v30 }
  0xcb   : > { %v732_v20 = vsel %vm731_vm3, %v728_v38, %v730_v48 }
  0xcc   : > { %v734_v2 = vadd.f32 %v732_v20, %v443_v10 }
  0xce   : > { %739 = vst.msk [vmem:[#allocation3] sm:$0xf] %vm2787_vm0, %v734_v2 }
  0xd0   : > { %v1181_v44 = vpop.f32.mrf.mxu2  ;;  %v1155_v53 = vpop.f32.mrf.mxu0 }
  0xd1   : > { %v1195_v9 = vpop.f32.mrf.mxu3  ;;  %v1169_v45 = vpop.f32.mrf.mxu1 }
  0xd2   : > { %v1196_v31 = vadd.f32 %v1195_v9, %v1181_v44  ;;  %v1170_v32 = vadd.f32 %v1169_v45, %v1155_v53 }
  0xd5   : > { %v1275_v25 = vld [vmem:[#allocation3] sm:$0xf] }
  0xd6   : > { %v1276_v4 = vmax.f32 %v1275_v25, 1e-24 }
  0xd8   : > { %1877 = vrsqrt.f32 %v1276_v4  ;;  %v1183_v56 = vpop.f32.mrf.mxu2  ;;  %vm1283_vm4 = vweird.f32 %v1276_v4 }
  0xd9   : > { %v1197_v14 = vpop.f32.mrf.mxu3 }
  0xda   : > { %v1198_v29 = vadd.f32 %v1197_v14, %v1183_v56 }
  0xde   : > { %v1878_v55 = vpop.eup %1877 }
  0xdf   : > { %v1278_v42 = vmul.f32 %v1878_v55, %v1276_v4  ;;  %vm1284_vm5 = vweird.f32 %v1878_v55 }
  0xe0   : > { %vm1285_vm6 = vmor %vm1283_vm4, %vm1284_vm5 }
  0xe1   : > { %v1279_v47 = vmul.f32 %v1878_v55, %v1278_v42 }
  0xe3   : > { %v1280_v18 = vmul.f32 0.5, %v1279_v47 }
  0xe5   : > { %v1281_v54 = vsub.f32 1.5, %v1280_v18 }
  0xe7   : > { %v1282_v51 = vmul.f32 %v1878_v55, %v1281_v54 }
  0xe8   : > { %v1209_v49 = vpop.f32.mrf.mxu0 }
  0xe9   : > { %v1223_v27 = vpop.f32.mrf.mxu1  ;;  %v1286_v3 = vsel %vm1285_vm6, %v1878_v55, %v1282_v51 }
  0xea   : > { %v1296_v61 = vperm.slane %v1286_v3, 0  ;;  %v1297_v22 = vperm.slane %v1286_v3, 1  ;;  %v1224_v62 = vadd.f32 %v1223_v27, %v1209_v49  ;;  %v1298_v58 = vperm.slane %v1286_v3, 2 }
  0xeb   : > { %v1299_v50 = vperm.slane %v1286_v3, 3 }
  0xec   : > { %v1304_v46 = vmul.f32 %v1296_v61, %v1168_v37  ;;  %v1305_v0 = vmul.f32 %v1297_v22, %v1196_v31  ;;  %v1308_v28 = vmul.f32 %v1296_v61, %v1170_v32  ;;  %v1309_v52 = vmul.f32 %v1297_v22, %v1198_v29 }
  0xed   : > { %v1306_v5 = vmul.f32 %v1298_v58, %v1224_v62 }
  0xee   : > { %1312 = vst [vmem:[%s219_s21] sm:$0xff] %v1304_v46 }
  0xef   : > { %1313 = vst [vmem:[%s219_s21 + $0x8] sm:$0xff] %v1305_v0 }
  0xf0   : > { %v1237_v21 = vpop.f32.mrf.mxu2  ;;  %v1211_v17 = vpop.f32.mrf.mxu0  ;;  %1316 = vst [vmem:[%s219_s21 + $0x20] sm:$0xff] %v1308_v28 }
  0xf1   : > { %v1251_v57 = vpop.f32.mrf.mxu3  ;;  %v1225_v23 = vpop.f32.mrf.mxu1  ;;  %1317 = vst [vmem:[%s219_s21 + $0x28] sm:$0xff] %v1309_v52 }
  0xf2   : > { %v1252_v59 = vadd.f32 %v1251_v57, %v1237_v21  ;;  %v1226_v1 = vadd.f32 %v1225_v23, %v1211_v17  ;;  %1314 = vst [vmem:[%s219_s21 + $0x10] sm:$0xff] %v1306_v5 }
  0xf4   : > { %v1307_v41 = vmul.f32 %v1299_v50, %v1252_v59  ;;  %v1310_v16 = vmul.f32 %v1298_v58, %v1226_v1 }
  0xf6   : > { %1315 = vst [vmem:[%s219_s21 + $0x18] sm:$0xff] %v1307_v41 }
  0xf7   : > { %1318 = vst [vmem:[%s219_s21 + $0x30] sm:$0xff] %v1310_v16 }
  0xf8   : > { %v1239_v40 = vpop.f32.mrf.mxu2 }
  0xf9   : > { %v1253_v34 = vpop.f32.mrf.mxu3 }
  0xfa   : > { %v1254_v43 = vadd.f32 %v1253_v34, %v1239_v40 }
  0xfc   : > { %v1311_v8 = vmul.f32 %v1299_v50, %v1254_v43 }
  0xfe   : > { %1319 = vst [vmem:[%s219_s21 + $0x38] sm:$0xff] %v1311_v8 }
  0xff   : > { %1966 = shalt.err (!%p1963_p0)
}
 0x100   : > { %s2034_s30 = smov 512   ;;  %s2035_s6 = smov 1024  }
 0x101   : > { %s2036_s7 = smov 32  }
 0x102   : > { %1801 = dma.vmem_to_hbm [thread:$0]  (%p2131_p5), %s1337_s22, 1024, %s1339_s12, %s1321_s23, %s2034_s30, %s2035_s6, %s2036_s7  }
 0x103 PF: > { %s1353_s17 = sand.u32 1, %s2005_s9   ;;  %p1812_p3 = pnand %p1450_p11, %p2101_p6 }
 0x104   : > { %s1354_s19 = scalar_lea.sflag [#allocation6], %s1353_s17 }
 0x105   : > { %p1813_p7 = pneg %p1812_p3 }
 0x107   : > { %2000 = dma.done.wait (%p1813_p7), %s1354_s19, 1024  }
 0x108   : > { %2002 = vsyncadd (%p1813_p7), %s1354_s19, 4294966272  ;;  %s19_s14 = sadd.s32 1, %s2025_s14   ;;  %s3382_s9 = smov %s2009_s10 }
 0x109   : > { %p16_p9 = scmp.ge.s32.totalorder %s19_s14, 4   ;;  %s3383_s10 = smov %s2013_s11 }
 0x10a   : > { %s3384_s11 = smov %s2140_s8  ;;  %s3385_s12 = smov %s2021_s13 }
 0x10b   : > { %s3386_s13 = smov %s3388_s29  ;;  %18 = sbr.rel (!%p16_p9) target bundleno = 7 (0x7), region = 95 }
 0x110   :  { %1360 = vsyncpa [#allocation5], 1 }
 0x111   :  { %1362 = vsyncpa [#allocation5 + $0x1], 1 }
 0x112   :  { %1363 = vsyncpa [#allocation8], 1 }
 0x113   :  { %1365 = vsyncpa [#allocation8 + $0x1], 1 }
 0x114   :  { %1366 = vsyncpa [#allocation6], 1 }
 0x115   :  { %1368 = vsyncpa [#allocation6 + $0x1], 1 }

</bundles_post_ra>
